<compile_context>
chip_gen: v5e
topology: v5e:2x2
jax: 0.10.0
libtpu: 0.0.40
codegen_flags: <defaults>
</compile_context>

<pallas_src>
import functools
import math

import jax
import jax.numpy as jnp
from jax import lax
from jax.experimental import pallas as pl
from jax.experimental.pallas import tpu as pltpu

NUM_GROUPS = 8
EPS = 1e-5
LANE = 128


def _round_up(x, m):
    return (x + m - 1) // m * m


def _pick_q_tile(hw):
    for cand in (512, 256, 128):
        if hw % cand == 0 and hw // cand >= 2:
            return cand
    return hw


def _attention_block_kernel(x_ref, gamma_ref, beta_ref, gmat_ref, gmat_t_ref,
                            wq_ref, wk_ref, wv_ref, wout_ref,
                            bq_ref, bk_ref, bv_ref, bout_ref,
                            o_ref,
                            k_sc, v_sc, scale_sc, shift_sc,
                            *, hw, tq, inv_cnt, att_scale):
    qi = pl.program_id(1)

    # ---------- once per sample (first query tile): GroupNorm stats + full K/V ----------
    @pl.when(qi == 0)
    def _():
        x = x_ref[0]                                   # [HW, Cp] f32
        g = gmat_ref[...]                              # [G, Cp]  one-hot (0 on pad lanes)
        gt = gmat_t_ref[...]                           # [Cp, G]

        # two-pass mean / variance per group; broadcast back to channels via gmat
        s1 = jnp.sum(x, axis=0, keepdims=True)                                  # [1, Cp]
        gmean = jnp.dot(s1, gt, preferred_element_type=jnp.float32) * inv_cnt   # [1, G]
        mean_c = jnp.dot(gmean, g, preferred_element_type=jnp.float32)          # [1, Cp]
        d = x - mean_c
        s2 = jnp.sum(d * d, axis=0, keepdims=True)                              # [1, Cp]
        gvar = jnp.dot(s2, gt, preferred_element_type=jnp.float32) * inv_cnt    # [1, G]
        var_c = jnp.dot(gvar, g, preferred_element_type=jnp.float32)            # [1, Cp]

        inv = lax.rsqrt(var_c + EPS)
        scale_c = inv * gamma_ref[...]                 # [1, Cp]
        shift_c = beta_ref[...] - mean_c * scale_c     # [1, Cp]
        scale_sc[...] = scale_c
        shift_sc[...] = shift_c

        # full-sample K / V projections, kept resident in VMEM (bf16) across query tiles
        xn = (x * scale_c + shift_c).astype(jnp.bfloat16)                        # [HW, Cp]
        k = jnp.dot(xn, wk_ref[...], preferred_element_type=jnp.float32) + bk_ref[...]
        v = jnp.dot(xn, wv_ref[...], preferred_element_type=jnp.float32) + bv_ref[...]
        k_sc[...] = k.astype(jnp.bfloat16)
        v_sc[...] = v.astype(jnp.bfloat16)

    # ---------- per query tile ----------
    start = pl.multiple_of(qi * tq, tq)
    x_t = x_ref[0, pl.ds(start, tq), :]                                          # [tq, Cp] f32
    xn_t = (x_t * scale_sc[...] + shift_sc[...]).astype(jnp.bfloat16)

    q = jnp.dot(xn_t, wq_ref[...], preferred_element_type=jnp.float32) + bq_ref[...]
    q = (q * att_scale).astype(jnp.bfloat16)           # fold 1/sqrt(C) into q   [tq, Cp]

    # logits against all keys (K resident in scratch); softmax statistics in f32
    logits = lax.dot_general(q, k_sc[...], (((1,), (1,)), ((), ())),
                             preferred_element_type=jnp.float32)                 # [tq, HW]
    m = jnp.max(logits, axis=-1, keepdims=True)
    p = jnp.exp(logits - m)
    denom = jnp.sum(p, axis=-1, keepdims=True)                                   # [tq, 1]

    # normalize AFTER the PV matmul: a [tq,C] multiply instead of [tq,HW]
    pv = jnp.dot(p.astype(jnp.bfloat16), v_sc[...],
                 preferred_element_type=jnp.float32)                             # [tq, Cp]
    attn_out = pv * pl.reciprocal(denom, approx=True)

    out = jnp.dot(attn_out.astype(jnp.bfloat16), wout_ref[...],
                  preferred_element_type=jnp.float32) + bout_ref[...]
    o_ref[0] = (out + x_t).astype(o_ref.dtype)


def attention_block(x_nchw, params):
    """x_nchw: [B, C, H, W] float32. Returns [B, C, H, W]."""
    b, c, h, w = x_nchw.shape
    assert c % NUM_GROUPS == 0
    hw = h * w
    cp = _round_up(c, LANE)
    cpg = c // NUM_GROUPS
    tq = _pick_q_tile(hw)
    nq = hw // tq
    att_scale = c ** (-0.5)

    # NCHW -> [B, HW, Cp] (zero-padded, lane-aligned, channels-last).
    # TODO(synk): a channels-last surrounding model would feed [B, HW, C] directly and skip
    # this transpose round-trip (an extra HBM read+write of the activations per call).
    x = jnp.transpose(x_nchw, (0, 2, 3, 1)).reshape(b, hw, c).astype(jnp.float32)
    x = jnp.pad(x, ((0, 0), (0, 0), (0, cp - c)))

    def pad_vec(v):                       # [c] -> [1, cp] f32
        return jnp.pad(v.astype(jnp.float32), (0, cp - c)).reshape(1, cp)

    def pad_wT(wmat):                     # [out=c, in=c] -> [in=cp, out=cp] bf16
        wt = jnp.pad(wmat.astype(jnp.float32).T, ((0, cp - c), (0, cp - c)))
        return wt.astype(jnp.bfloat16)

    gamma = pad_vec(params["gamma"])
    beta = pad_vec(params["beta"])
    w_qkv, b_qkv = params["w_qkv"], params["b_qkv"]
    wq, wk, wv = (pad_wT(w_qkv[i * c:(i + 1) * c]) for i in range(3))
    bq, bk, bv = (pad_vec(b_qkv[i * c:(i + 1) * c]) for i in range(3))
    wout = pad_wT(params["w_out"])
    bout = pad_vec(params["b_out"])

    # one-hot group membership matrix (padded lanes belong to no group) and its transpose
    ch = jnp.arange(cp)
    gmat = (ch[None, :] // cpg == jnp.arange(NUM_GROUPS)[:, None]).astype(jnp.float32)
    gmat_t = gmat.T

    kernel = functools.partial(_attention_block_kernel, hw=hw, tq=tq,
                               inv_cnt=1.0 / float(hw * cpg), att_scale=att_scale)

    const = lambda b_, q_: (0, 0)
    out = pl.pallas_call(
        kernel,
        out_shape=jax.ShapeDtypeStruct((b, hw, cp), jnp.float32),
        grid_spec=pltpu.PrefetchScalarGridSpec(
            num_scalar_prefetch=0,
            grid=(b, nq),
            in_specs=[
                pl.BlockSpec((1, hw, cp), lambda b_, q_: (b_, 0, 0)),   # x (full sample)
                pl.BlockSpec((1, cp), const),                           # gamma
                pl.BlockSpec((1, cp), const),                           # beta
                pl.BlockSpec((NUM_GROUPS, cp), const),                  # gmat
                pl.BlockSpec((cp, NUM_GROUPS), const),                  # gmat^T
                pl.BlockSpec((cp, cp), const),                          # Wq^T (bf16)
                pl.BlockSpec((cp, cp), const),                          # Wk^T (bf16)
                pl.BlockSpec((cp, cp), const),                          # Wv^T (bf16)
                pl.BlockSpec((cp, cp), const),                          # Wout^T (bf16)
                pl.BlockSpec((1, cp), const),                           # b_q
                pl.BlockSpec((1, cp), const),                           # b_k
                pl.BlockSpec((1, cp), const),                           # b_v
                pl.BlockSpec((1, cp), const),                           # b_out
            ],
            out_specs=pl.BlockSpec((1, tq, cp), lambda b_, q_: (b_, q_, 0)),
            scratch_shapes=[
                pltpu.VMEM((hw, cp), jnp.bfloat16),    # K (full sample, carried over q tiles)
                pltpu.VMEM((hw, cp), jnp.bfloat16),    # V (full sample, carried over q tiles)
                pltpu.VMEM((1, cp), jnp.float32),      # per-channel norm scale
                pltpu.VMEM((1, cp), jnp.float32),      # per-channel norm shift
            ]),
        compiler_params=pltpu.CompilerParams(
            dimension_semantics=("parallel", "arbitrary"),
            vmem_limit_bytes=64 * 1024 * 1024),
    )(x, gamma, beta, gmat, gmat_t, wq, wk, wv, wout, bq, bk, bv, bout)

    out = out[:, :, :c].reshape(b, h, w, c)
    return jnp.transpose(out, (0, 3, 1, 2))


def reference(x, params):
    """Pure-JAX f32 reference mirroring the PyTorch forward (NCHW)."""
    b, c, h, w = x.shape
    cpg = c // NUM_GROUPS
    xg = x.reshape(b, NUM_GROUPS, cpg, h, w)
    mean = xg.mean(axis=(2, 3, 4), keepdims=True)
    var = xg.var(axis=(2, 3, 4), keepdims=True)
    xn = ((xg - mean) / jnp.sqrt(var + EPS)).reshape(b, c, h, w)
    xn = xn * params["gamma"][None, :, None, None] + params["beta"][None, :, None, None]

    qkv = jnp.einsum('oc,bchw->bohw', params["w_qkv"], xn) \
        + params["b_qkv"][None, :, None, None]
    qkv = qkv.reshape(b, 3, c, h * w)
    q, k, v = qkv[:, 0], qkv[:, 1], qkv[:, 2]
    attn = jnp.einsum('bci,bcj->bij', q, k) * (c ** (-0.5))
    attn = jax.nn.softmax(attn, axis=-1)
    out = jnp.einsum('bij,bcj->bci', attn, v).reshape(b, c, h, w)
    out = jnp.einsum('oc,bchw->bohw', params["w_out"], out) \
        + params["b_out"][None, :, None, None]
    return out + x


def make_params(key, channels):
    ks = jax.random.split(key, 6)
    c = channels
    return {
        "gamma": 1.0 + 0.1 * jax.random.normal(ks[0], (c,), jnp.float32),
        "beta": 0.1 * jax.random.normal(ks[1], (c,), jnp.float32),
        "w_qkv": jax.random.normal(ks[2], (3 * c, c), jnp.float32) / math.sqrt(c),
        "b_qkv": 0.05 * jax.random.normal(ks[3], (3 * c,), jnp.float32),
        "w_out": jax.random.normal(ks[4], (c, c), jnp.float32) / math.sqrt(c),
        "b_out": 0.05 * jax.random.normal(ks[5], (c,), jnp.float32),
    }


if __name__ == "__main__":
    key = jax.random.PRNGKey(0)
    kx, kp = jax.random.split(key)

    B, C, H, W = 2, 32, 16, 16
    x = jax.random.normal(kx, (B, C, H, W), jnp.float32)
    params = make_params(kp, C)

    y = jax.block_until_ready(attention_block(x, params))
    y_ref = jax.block_until_ready(reference(x, params))

    assert y.shape == (B, C, H, W)
    # Kernel uses bf16 MXU operands with f32 accumulation (per perf review); compare
    # against the pure-f32 reference with a bf16-appropriate tolerance.
    assert jnp.allclose(y, y_ref, rtol=1e-2, atol=1e-2), \
        f"max abs err {jnp.max(jnp.abs(y - y_ref))}"
    print("KERNEL_OK")
</pallas_src>

<mosaic_0001>
module attributes {stable_mosaic.version = 11 : i64} {
  func.func @_attention_block_kernel(%arg0: i32, %arg1: i32, %arg2: memref<1x256x128xf32, #tpu.memory_space<vmem>>, %arg3: memref<1x128xf32, #tpu.memory_space<vmem>>, %arg4: memref<1x128xf32, #tpu.memory_space<vmem>>, %arg5: memref<8x128xf32, #tpu.memory_space<vmem>>, %arg6: memref<128x8xf32, #tpu.memory_space<vmem>>, %arg7: memref<128x128xbf16, #tpu.memory_space<vmem>>, %arg8: memref<128x128xbf16, #tpu.memory_space<vmem>>, %arg9: memref<128x128xbf16, #tpu.memory_space<vmem>>, %arg10: memref<128x128xbf16, #tpu.memory_space<vmem>>, %arg11: memref<1x128xf32, #tpu.memory_space<vmem>>, %arg12: memref<1x128xf32, #tpu.memory_space<vmem>>, %arg13: memref<1x128xf32, #tpu.memory_space<vmem>>, %arg14: memref<1x128xf32, #tpu.memory_space<vmem>>, %arg15: memref<1x128x128xf32, #tpu.memory_space<vmem>>, %arg16: memref<256x128xbf16, #tpu.memory_space<vmem>>, %arg17: memref<256x128xbf16, #tpu.memory_space<vmem>>, %arg18: memref<1x128xf32, #tpu.memory_space<vmem>>, %arg19: memref<1x128xf32, #tpu.memory_space<vmem>>) attributes {dimension_semantics = [#tpu.dimension_semantics<parallel>, #tpu.dimension_semantics<arbitrary>], iteration_bounds = array<i64: 2, 2>, scalar_prefetch = 0 : i64, scratch_operands = 4 : i64, tpu.core_type = #tpu.core_type<tc>, window_params = [{transform_indices = @transform_0, window_bounds = array<i64: 1, 256, 128>}, {pipeline_mode = #tpu.pipeline_mode<synchronous>, transform_indices = @transform_1, window_bounds = array<i64: 1, 128>}, {pipeline_mode = #tpu.pipeline_mode<synchronous>, transform_indices = @transform_2, window_bounds = array<i64: 1, 128>}, {pipeline_mode = #tpu.pipeline_mode<synchronous>, transform_indices = @transform_3, window_bounds = array<i64: 8, 128>}, {pipeline_mode = #tpu.pipeline_mode<synchronous>, transform_indices = @transform_4, window_bounds = array<i64: 128, 8>}, {pipeline_mode = #tpu.pipeline_mode<synchronous>, transform_indices = @transform_5, window_bounds = array<i64: 128, 128>}, {pipeline_mode = #tpu.pipeline_mode<synchronous>, transform_indices = @transform_6, window_bounds = array<i64: 128, 128>}, {pipeline_mode = #tpu.pipeline_mode<synchronous>, transform_indices = @transform_7, window_bounds = array<i64: 128, 128>}, {pipeline_mode = #tpu.pipeline_mode<synchronous>, transform_indices = @transform_8, window_bounds = array<i64: 128, 128>}, {pipeline_mode = #tpu.pipeline_mode<synchronous>, transform_indices = @transform_9, window_bounds = array<i64: 1, 128>}, {pipeline_mode = #tpu.pipeline_mode<synchronous>, transform_indices = @transform_10, window_bounds = array<i64: 1, 128>}, {pipeline_mode = #tpu.pipeline_mode<synchronous>, transform_indices = @transform_11, window_bounds = array<i64: 1, 128>}, {pipeline_mode = #tpu.pipeline_mode<synchronous>, transform_indices = @transform_12, window_bounds = array<i64: 1, 128>}, {transform_indices = @transform_13, window_bounds = array<i64: 1, 128, 128>}]} {
    %c0_i32 = arith.constant 0 : i32
    %0 = arith.cmpi eq, %arg1, %c0_i32 : i32
    %1 = arith.extui %0 : i1 to i32
    %c0_i32_0 = arith.constant 0 : i32
    %2 = arith.cmpi ne, %1, %c0_i32_0 : i32
    scf.if %2 {
      %c0_27 = arith.constant 0 : index
      %c0_28 = arith.constant 0 : index
      %c0_29 = arith.constant 0 : index
      %48 = vector.load %arg2[%c0_27, %c0_28, %c0_29] : memref<1x256x128xf32, #tpu.memory_space<vmem>>, vector<1x256x128xf32>
      %49 = vector.shape_cast %48 : vector<1x256x128xf32> to vector<256x128xf32>
      %c0_30 = arith.constant 0 : index
      %c0_31 = arith.constant 0 : index
      %50 = vector.load %arg5[%c0_30, %c0_31] : memref<8x128xf32, #tpu.memory_space<vmem>>, vector<8x128xf32>
      %c0_32 = arith.constant 0 : index
      %c0_33 = arith.constant 0 : index
      %51 = vector.load %arg6[%c0_32, %c0_33] : memref<128x8xf32, #tpu.memory_space<vmem>>, vector<128x8xf32>
      %cst_34 = arith.constant dense<0.000000e+00> : vector<128xf32>
      %52 = vector.multi_reduction <add>, %49, %cst_34 [0] : vector<256x128xf32> to vector<128xf32>
      %53 = vector.shape_cast %52 : vector<128xf32> to vector<1x128xf32>
      %cst_35 = arith.constant dense<0.000000e+00> : vector<1x8xf32>
      %54 = tpu.matmul %53, %51, %cst_35 {dimension_numbers = #tpu.dot_dimension_numbers<[1], [0], [0], [1], [0, 0, 1, 1], [], []>} : vector<1x128xf32>, vector<128x8xf32>, vector<1x8xf32> -> vector<1x8xf32>
      %cst_36 = arith.constant 9.765625E-4 : f32
      %55 = vector.broadcast %cst_36 : f32 to vector<1x8xf32>
      %56 = arith.mulf %54, %55 : vector<1x8xf32>
      %cst_37 = arith.constant dense<0.000000e+00> : vector<1x128xf32>
      %57 = tpu.matmul %56, %50, %cst_37 {dimension_numbers = #tpu.dot_dimension_numbers<[1], [0], [0], [1], [0, 0, 1, 1], [], []>} : vector<1x8xf32>, vector<8x128xf32>, vector<1x128xf32> -> vector<1x128xf32>
      %58 = vector.broadcast %57 : vector<1x128xf32> to vector<256x128xf32>
      %59 = arith.subf %49, %58 : vector<256x128xf32>
      %60 = arith.mulf %59, %59 : vector<256x128xf32>
      %cst_38 = arith.constant dense<0.000000e+00> : vector<128xf32>
      %61 = vector.multi_reduction <add>, %60, %cst_38 [0] : vector<256x128xf32> to vector<128xf32>
      %62 = vector.shape_cast %61 : vector<128xf32> to vector<1x128xf32>
      %cst_39 = arith.constant dense<0.000000e+00> : vector<1x8xf32>
      %63 = tpu.matmul %62, %51, %cst_39 {dimension_numbers = #tpu.dot_dimension_numbers<[1], [0], [0], [1], [0, 0, 1, 1], [], []>} : vector<1x128xf32>, vector<128x8xf32>, vector<1x8xf32> -> vector<1x8xf32>
      %cst_40 = arith.constant 9.765625E-4 : f32
      %64 = vector.broadcast %cst_40 : f32 to vector<1x8xf32>
      %65 = arith.mulf %63, %64 : vector<1x8xf32>
      %cst_41 = arith.constant dense<0.000000e+00> : vector<1x128xf32>
      %66 = tpu.matmul %65, %50, %cst_41 {dimension_numbers = #tpu.dot_dimension_numbers<[1], [0], [0], [1], [0, 0, 1, 1], [], []>} : vector<1x8xf32>, vector<8x128xf32>, vector<1x128xf32> -> vector<1x128xf32>
      %cst_42 = arith.constant 9.99999974E-6 : f32
      %67 = vector.broadcast %cst_42 : f32 to vector<1x128xf32>
      %68 = arith.addf %66, %67 : vector<1x128xf32>
      %69 = math.rsqrt %68 : vector<1x128xf32>
      %c0_43 = arith.constant 0 : index
      %c0_44 = arith.constant 0 : index
      %70 = vector.load %arg3[%c0_43, %c0_44] : memref<1x128xf32, #tpu.memory_space<vmem>>, vector<1x128xf32>
      %71 = arith.mulf %69, %70 : vector<1x128xf32>
      %c0_45 = arith.constant 0 : index
      %c0_46 = arith.constant 0 : index
      %72 = vector.load %arg4[%c0_45, %c0_46] : memref<1x128xf32, #tpu.memory_space<vmem>>, vector<1x128xf32>
      %73 = arith.mulf %57, %71 : vector<1x128xf32>
      %74 = arith.subf %72, %73 : vector<1x128xf32>
      %c0_47 = arith.constant 0 : index
      %c0_48 = arith.constant 0 : index
      %75 = vector.load %arg18[%c0_47, %c0_48] : memref<1x128xf32, #tpu.memory_space<vmem>>, vector<1x128xf32>
      tpu.vector_store %arg18[%c0_47, %c0_48], %71 {strides = array<i32>} : memref<1x128xf32, #tpu.memory_space<vmem>>, vector<1x128xf32>,
      %c0_49 = arith.constant 0 : index
      %c0_50 = arith.constant 0 : index
      %76 = vector.load %arg19[%c0_49, %c0_50] : memref<1x128xf32, #tpu.memory_space<vmem>>, vector<1x128xf32>
      tpu.vector_store %arg19[%c0_49, %c0_50], %74 {strides = array<i32>} : memref<1x128xf32, #tpu.memory_space<vmem>>, vector<1x128xf32>,
      %77 = vector.broadcast %71 : vector<1x128xf32> to vector<256x128xf32>
      %78 = arith.mulf %49, %77 : vector<256x128xf32>
      %79 = vector.broadcast %74 : vector<1x128xf32> to vector<256x128xf32>
      %80 = arith.addf %78, %79 : vector<256x128xf32>
      %81 = arith.truncf %80 : vector<256x128xf32> to vector<256x128xbf16>
      %c0_51 = arith.constant 0 : index
      %c0_52 = arith.constant 0 : index
      %82 = vector.load %arg8[%c0_51, %c0_52] : memref<128x128xbf16, #tpu.memory_space<vmem>>, vector<128x128xbf16>
      %cst_53 = arith.constant dense<0.000000e+00> : vector<256x128xf32>
      %83 = tpu.matmul %81, %82, %cst_53 {dimension_numbers = #tpu.dot_dimension_numbers<[1], [0], [0], [1], [0, 0, 1, 1], [], []>} : vector<256x128xbf16>, vector<128x128xbf16>, vector<256x128xf32> -> vector<256x128xf32>
      %c0_54 = arith.constant 0 : index
      %c0_55 = arith.constant 0 : index
      %84 = vector.load %arg12[%c0_54, %c0_55] : memref<1x128xf32, #tpu.memory_space<vmem>>, vector<1x128xf32>
      %85 = vector.broadcast %84 : vector<1x128xf32> to vector<256x128xf32>
      %86 = arith.addf %83, %85 : vector<256x128xf32>
      %c0_56 = arith.constant 0 : index
      %c0_57 = arith.constant 0 : index
      %87 = vector.load %arg9[%c0_56, %c0_57] : memref<128x128xbf16, #tpu.memory_space<vmem>>, vector<128x128xbf16>
      %cst_58 = arith.constant dense<0.000000e+00> : vector<256x128xf32>
      %88 = tpu.matmul %81, %87, %cst_58 {dimension_numbers = #tpu.dot_dimension_numbers<[1], [0], [0], [1], [0, 0, 1, 1], [], []>} : vector<256x128xbf16>, vector<128x128xbf16>, vector<256x128xf32> -> vector<256x128xf32>
      %c0_59 = arith.constant 0 : index
      %c0_60 = arith.constant 0 : index
      %89 = vector.load %arg13[%c0_59, %c0_60] : memref<1x128xf32, #tpu.memory_space<vmem>>, vector<1x128xf32>
      %90 = vector.broadcast %89 : vector<1x128xf32> to vector<256x128xf32>
      %91 = arith.addf %88, %90 : vector<256x128xf32>
      %92 = arith.truncf %86 : vector<256x128xf32> to vector<256x128xbf16>
      %c0_61 = arith.constant 0 : index
      %c0_62 = arith.constant 0 : index
      %93 = vector.load %arg16[%c0_61, %c0_62] : memref<256x128xbf16, #tpu.memory_space<vmem>>, vector<256x128xbf16>
      tpu.vector_store %arg16[%c0_61, %c0_62], %92 {strides = array<i32>} : memref<256x128xbf16, #tpu.memory_space<vmem>>, vector<256x128xbf16>,
      %94 = arith.truncf %91 : vector<256x128xf32> to vector<256x128xbf16>
      %c0_63 = arith.constant 0 : index
      %c0_64 = arith.constant 0 : index
      %95 = vector.load %arg17[%c0_63, %c0_64] : memref<256x128xbf16, #tpu.memory_space<vmem>>, vector<256x128xbf16>
      tpu.vector_store %arg17[%c0_63, %c0_64], %94 {strides = array<i32>} : memref<256x128xbf16, #tpu.memory_space<vmem>>, vector<256x128xbf16>,
    } else {
    }
    %c128_i32 = arith.constant 128 : i32
    %3 = arith.muli %arg1, %c128_i32 : i32
    %4 = tpu.assume_multiple %3, 128 : i32
    %c0 = arith.constant 0 : index
    %5 = arith.index_cast %4 : i32 to index
    %c0_1 = arith.constant 0 : index
    %6 = vector.load %arg2[%c0, %5, %c0_1] : memref<1x256x128xf32, #tpu.memory_space<vmem>>, vector<1x128x128xf32>
    %7 = vector.shape_cast %6 : vector<1x128x128xf32> to vector<128x128xf32>
    %c0_2 = arith.constant 0 : index
    %c0_3 = arith.constant 0 : index
    %8 = vector.load %arg18[%c0_2, %c0_3] : memref<1x128xf32, #tpu.memory_space<vmem>>, vector<1x128xf32>
    %9 = vector.broadcast %8 : vector<1x128xf32> to vector<128x128xf32>
    %10 = arith.mulf %7, %9 : vector<128x128xf32>
    %c0_4 = arith.constant 0 : index
    %c0_5 = arith.constant 0 : index
    %11 = vector.load %arg19[%c0_4, %c0_5] : memref<1x128xf32, #tpu.memory_space<vmem>>, vector<1x128xf32>
    %12 = vector.broadcast %11 : vector<1x128xf32> to vector<128x128xf32>
    %13 = arith.addf %10, %12 : vector<128x128xf32>
    %14 = arith.truncf %13 : vector<128x128xf32> to vector<128x128xbf16>
    %c0_6 = arith.constant 0 : index
    %c0_7 = arith.constant 0 : index
    %15 = vector.load %arg7[%c0_6, %c0_7] : memref<128x128xbf16, #tpu.memory_space<vmem>>, vector<128x128xbf16>
    %cst = arith.constant dense<0.000000e+00> : vector<128x128xf32>
    %16 = tpu.matmul %14, %15, %cst {dimension_numbers = #tpu.dot_dimension_numbers<[1], [0], [0], [1], [0, 0, 1, 1], [], []>} : vector<128x128xbf16>, vector<128x128xbf16>, vector<128x128xf32> -> vector<128x128xf32>
    %c0_8 = arith.constant 0 : index
    %c0_9 = arith.constant 0 : index
    %17 = vector.load %arg11[%c0_8, %c0_9] : memref<1x128xf32, #tpu.memory_space<vmem>>, vector<1x128xf32>
    %18 = vector.broadcast %17 : vector<1x128xf32> to vector<128x128xf32>
    %19 = arith.addf %16, %18 : vector<128x128xf32>
    %cst_10 = arith.constant 0.176776692 : f32
    %20 = vector.broadcast %cst_10 : f32 to vector<128x128xf32>
    %21 = arith.mulf %19, %20 : vector<128x128xf32>
    %22 = arith.truncf %21 : vector<128x128xf32> to vector<128x128xbf16>
    %c0_11 = arith.constant 0 : index
    %c0_12 = arith.constant 0 : index
    %23 = vector.load %arg16[%c0_11, %c0_12] : memref<256x128xbf16, #tpu.memory_space<vmem>>, vector<256x128xbf16>
    %cst_13 = arith.constant dense<0.000000e+00> : vector<128x256xf32>
    %24 = tpu.matmul %22, %23, %cst_13 {dimension_numbers = #tpu.dot_dimension_numbers<[1], [1], [0], [0], [0, 0, 1, 0], [], []>} : vector<128x128xbf16>, vector<256x128xbf16>, vector<128x256xf32> -> vector<128x256xf32>
    %cst_14 = arith.constant dense<0xFF800000> : vector<128xf32>
    %25 = vector.multi_reduction <maximumf>, %24, %cst_14 [1] : vector<128x256xf32> to vector<128xf32>
    %26 = vector.shape_cast %25 : vector<128xf32> to vector<128x1xf32>
    %27 = vector.broadcast %26 : vector<128x1xf32> to vector<128x256xf32>
    %28 = arith.subf %24, %27 : vector<128x256xf32>
    %29 = math.exp %28 : vector<128x256xf32>
    %cst_15 = arith.constant dense<0.000000e+00> : vector<128xf32>
    %30 = vector.multi_reduction <add>, %29, %cst_15 [1] : vector<128x256xf32> to vector<128xf32>
    %31 = vector.shape_cast %30 : vector<128xf32> to vector<128x1xf32>
    %32 = arith.truncf %29 : vector<128x256xf32> to vector<128x256xbf16>
    %c0_16 = arith.constant 0 : index
    %c0_17 = arith.constant 0 : index
    %33 = vector.load %arg17[%c0_16, %c0_17] : memref<256x128xbf16, #tpu.memory_space<vmem>>, vector<256x128xbf16>
    %cst_18 = arith.constant dense<0.000000e+00> : vector<128x128xf32>
    %34 = tpu.matmul %32, %33, %cst_18 {dimension_numbers = #tpu.dot_dimension_numbers<[1], [0], [0], [1], [0, 0, 1, 1], [], []>} : vector<128x256xbf16>, vector<256x128xbf16>, vector<128x128xf32> -> vector<128x128xf32>
    %35 = tpu.reciprocal %31 {approx = true} : vector<128x1xf32> -> vector<128x1xf32>
    %36 = vector.broadcast %35 : vector<128x1xf32> to vector<128x128xf32>
    %37 = arith.mulf %34, %36 : vector<128x128xf32>
    %38 = arith.truncf %37 : vector<128x128xf32> to vector<128x128xbf16>
    %c0_19 = arith.constant 0 : index
    %c0_20 = arith.constant 0 : index
    %39 = vector.load %arg10[%c0_19, %c0_20] : memref<128x128xbf16, #tpu.memory_space<vmem>>, vector<128x128xbf16>
    %cst_21 = arith.constant dense<0.000000e+00> : vector<128x128xf32>
    %40 = tpu.matmul %38, %39, %cst_21 {dimension_numbers = #tpu.dot_dimension_numbers<[1], [0], [0], [1], [0, 0, 1, 1], [], []>} : vector<128x128xbf16>, vector<128x128xbf16>, vector<128x128xf32> -> vector<128x128xf32>
    %c0_22 = arith.constant 0 : index
    %c0_23 = arith.constant 0 : index
    %41 = vector.load %arg14[%c0_22, %c0_23] : memref<1x128xf32, #tpu.memory_space<vmem>>, vector<1x128xf32>
    %42 = vector.broadcast %41 : vector<1x128xf32> to vector<128x128xf32>
    %43 = arith.addf %40, %42 : vector<128x128xf32>
    %44 = arith.addf %43, %7 : vector<128x128xf32>
    %c0_24 = arith.constant 0 : index
    %c0_25 = arith.constant 0 : index
    %c0_26 = arith.constant 0 : index
    %45 = vector.load %arg15[%c0_24, %c0_25, %c0_26] : memref<1x128x128xf32, #tpu.memory_space<vmem>>, vector<1x128x128xf32>
    %46 = vector.shape_cast %45 : vector<1x128x128xf32> to vector<128x128xf32>
    %47 = vector.shape_cast %44 : vector<128x128xf32> to vector<1x128x128xf32>
    tpu.vector_store %arg15[%c0_24, %c0_25, %c0_26], %47 {strides = array<i32>} : memref<1x128x128xf32, #tpu.memory_space<vmem>>, vector<1x128x128xf32>,
    return
  }
  func.func @transform_0(%arg0: i32, %arg1: i32) -> (i32, i32, i32) {
    %c0_i32 = arith.constant 0 : i32
    %c0_i32_0 = arith.constant 0 : i32
    %c0_i32_1 = arith.constant 0 : i32
    return %arg0, %c0_i32, %c0_i32_0 : i32, i32, i32
  }
  func.func @transform_1(%arg0: i32, %arg1: i32) -> (i32, i32) {
    %c0_i32 = arith.constant 0 : i32
    %c0_i32_0 = arith.constant 0 : i32
    %c0_i32_1 = arith.constant 0 : i32
    return %c0_i32, %c0_i32_0 : i32, i32
  }
  func.func @transform_2(%arg0: i32, %arg1: i32) -> (i32, i32) {
    %c0_i32 = arith.constant 0 : i32
    %c0_i32_0 = arith.constant 0 : i32
    %c0_i32_1 = arith.constant 0 : i32
    return %c0_i32, %c0_i32_0 : i32, i32
  }
  func.func @transform_3(%arg0: i32, %arg1: i32) -> (i32, i32) {
    %c0_i32 = arith.constant 0 : i32
    %c0_i32_0 = arith.constant 0 : i32
    %c0_i32_1 = arith.constant 0 : i32
    return %c0_i32, %c0_i32_0 : i32, i32
  }
  func.func @transform_4(%arg0: i32, %arg1: i32) -> (i32, i32) {
    %c0_i32 = arith.constant 0 : i32
    %c0_i32_0 = arith.constant 0 : i32
    %c0_i32_1 = arith.constant 0 : i32
    return %c0_i32, %c0_i32_0 : i32, i32
  }
  func.func @transform_5(%arg0: i32, %arg1: i32) -> (i32, i32) {
    %c0_i32 = arith.constant 0 : i32
    %c0_i32_0 = arith.constant 0 : i32
    %c0_i32_1 = arith.constant 0 : i32
    return %c0_i32, %c0_i32_0 : i32, i32
  }
  func.func @transform_6(%arg0: i32, %arg1: i32) -> (i32, i32) {
    %c0_i32 = arith.constant 0 : i32
    %c0_i32_0 = arith.constant 0 : i32
    %c0_i32_1 = arith.constant 0 : i32
    return %c0_i32, %c0_i32_0 : i32, i32
  }
  func.func @transform_7(%arg0: i32, %arg1: i32) -> (i32, i32) {
    %c0_i32 = arith.constant 0 : i32
    %c0_i32_0 = arith.constant 0 : i32
    %c0_i32_1 = arith.constant 0 : i32
    return %c0_i32, %c0_i32_0 : i32, i32
  }
  func.func @transform_8(%arg0: i32, %arg1: i32) -> (i32, i32) {
    %c0_i32 = arith.constant 0 : i32
    %c0_i32_0 = arith.constant 0 : i32
    %c0_i32_1 = arith.constant 0 : i32
    return %c0_i32, %c0_i32_0 : i32, i32
  }
  func.func @transform_9(%arg0: i32, %arg1: i32) -> (i32, i32) {
    %c0_i32 = arith.constant 0 : i32
    %c0_i32_0 = arith.constant 0 : i32
    %c0_i32_1 = arith.constant 0 : i32
    return %c0_i32, %c0_i32_0 : i32, i32
  }
  func.func @transform_10(%arg0: i32, %arg1: i32) -> (i32, i32) {
    %c0_i32 = arith.constant 0 : i32
    %c0_i32_0 = arith.constant 0 : i32
    %c0_i32_1 = arith.constant 0 : i32
    return %c0_i32, %c0_i32_0 : i32, i32
  }
  func.func @transform_11(%arg0: i32, %arg1: i32) -> (i32, i32) {
    %c0_i32 = arith.constant 0 : i32
    %c0_i32_0 = arith.constant 0 : i32
    %c0_i32_1 = arith.constant 0 : i32
    return %c0_i32, %c0_i32_0 : i32, i32
  }
  func.func @transform_12(%arg0: i32, %arg1: i32) -> (i32, i32) {
    %c0_i32 = arith.constant 0 : i32
    %c0_i32_0 = arith.constant 0 : i32
    %c0_i32_1 = arith.constant 0 : i32
    return %c0_i32, %c0_i32_0 : i32, i32
  }
  func.func @transform_13(%arg0: i32, %arg1: i32) -> (i32, i32, i32) {
    %c0_i32 = arith.constant 0 : i32
    %c0_i32_0 = arith.constant 0 : i32
    return %arg0, %arg1, %c0_i32 : i32, i32, i32
  }
}

</mosaic_0001>

<bundles_post_ra>
// kernel: tpu_custom_call.1
= control target key start
LH: loop header
LB: loop body
LE: loop exit
PB: predicated region body
PF: predicated region fallthrough
CT: control target
= control target key end

     0   :  { %s4660_s0 = inlined_call_operand.hbm [shape: f32[2,256,128], index: 0, kind: input, shape index: {}]   ;;  %s4661_s1 = inlined_call_operand.hbm [shape: f32[1,128], index: 1, kind: input, shape index: {}]   ;;  %s4662_s2 = inlined_call_operand.vmem [shape: f32[1,128], index: 2, kind: input, shape index: {}]   ;;  %s4663_s3 = inlined_call_operand.vmem [shape: f32[8,128], index: 3, kind: input, shape index: {}]   ;;  %s4664_s4 = inlined_call_operand.vmem [shape: f32[128,8], index: 4, kind: input, shape index: {}]   ;;  %s4665_s5 = inlined_call_operand.vmem [shape: bf16[128,128], index: 5, kind: input, shape index: {}]   ;;  %s4666_s6 = inlined_call_operand.vmem [shape: bf16[128,128], index: 6, kind: input, shape index: {}]   ;;  %s4667_s7 = inlined_call_operand.hbm [shape: bf16[128,128], index: 7, kind: input, shape index: {}]   ;;  %s4668_s8 = inlined_call_operand.hbm [shape: bf16[128,128], index: 8, kind: input, shape index: {}]   ;;  %s4669_s9 = inlined_call_operand.vmem [shape: f32[1,128], index: 9, kind: input, shape index: {}]   ;;  %s4670_s10 = inlined_call_operand.vmem [shape: f32[1,128], index: 10, kind: input, shape index: {}]   ;;  %s4671_s11 = inlined_call_operand.vmem [shape: f32[1,128], index: 11, kind: input, shape index: {}]   ;;  %s4672_s12 = inlined_call_operand.vmem [shape: f32[1,128], index: 12, kind: input, shape index: {}]   ;;  %s4673_s13 = inlined_call_operand.hbm [shape: f32[2,256,128], index: 13, kind: output, shape index: {}]  }
   0x1   :  { %4683 = sst [smem:[#allocation25_spill]] %s4661_s1 }
   0x2   :  { %4684 = sst [smem:[#allocation26_spill]] %s4662_s2 }
   0x3   :  { %4685 = sst [smem:[#allocation27_spill]] %s4665_s5 }
   0x4   :  { %4686 = sst [smem:[#allocation28_spill]] %s4666_s6 }
   0x5   :  { %4687 = sst [smem:[#allocation29_spill]] %s4667_s7 }
   0x6   :  { %4688 = sst [smem:[#allocation30_spill]] %s4668_s8 }
   0x7   :  { %4689 = sst [smem:[#allocation31_spill]] %s4669_s9 }
   0x8   :  { %4690 = sst [smem:[#allocation32_spill]] %s4670_s10 }
   0x9   :  { %4691 = sst [smem:[#allocation33_spill]] %s4671_s11 }
   0xa   :  { %4692 = sst [smem:[#allocation34_spill]] %s4672_s12 }
   0xb   :  { %4693 = sst [smem:[#allocation35_spill]] %s4673_s13 }
   0xc   :  { %18 = vsyncpa [#allocation7], 0 }
   0xd   :  { %20 = vsyncpa [#allocation7 + $0x1], 0 }
   0xe   :  { %21 = vsyncpa [#allocation10], 0 }
   0xf   :  { %22 = vsyncpa [#allocation13], 0 }
  0x10   :  { %23 = vsyncpa [#allocation8], 0 }
  0x11   :  { %25 = vsyncpa [#allocation8 + $0x1], 0  ;;  %s3699_s25 = smov 0   ;;  %s3701_s26 = smov 0  }
  0x12   :  { %s3703_s27 = smov 0   ;;  %s3705_s28 = smov 0  }
  0x13   :  { %s3707_s29 = smov 0   ;;  %s3709_s30 = smov 0  }
  0x14   :  { %s3711_s14 = smov 0   ;;  %s3713_s15 = smov 0  }
  0x15   :  { %s3715_s16 = smov 0   ;;  %s3717_s17 = smov 0  }
  0x16   :  { %s3719_s18 = smov 0  }
  0x17 LB: > { %4694 = sst [smem:[#allocation19_spill]] %s3578_s25  ;;  %s2540_s19 = sadd.s32 4294967295, %s3618_s18   ;;  %s3618_s18 = sphi %s3719_s18, %s31_s18   ;;  %s3614_s17 = sphi %s3717_s17, %s4733_s17   ;;  %s3610_s16 = sphi %s3715_s16, %s4725_s16   ;;  %s3606_s15 = sphi %s3713_s15, %s4732_s15   ;;  %s3602_s14 = sphi %s3711_s14, %s4724_s14   ;;  %s3598_s30 = sphi %s3709_s30, %s4731_s30   ;;  %s3594_s29 = sphi %s3707_s29, %s4730_s29   ;;  %s3590_s28 = sphi %s3705_s28, %s4729_s28   ;;  %s3586_s27 = sphi %s3703_s27, %s4728_s27   ;;  %s3582_s26 = sphi %s3701_s26, %s4727_s26   ;;  %s3578_s25 = sphi %s3699_s25, %s4726_s25  }
  0x18   : > { %4695 = sst [smem:[#allocation20_spill]] %s3606_s15  ;;  %s2541_s20 = sadd.s32 4294967294, %s3618_s18  }
  0x19   : > { %4696 = sst [smem:[#allocation21_spill]] %s3610_s16  ;;  %p63_p0 = scmp.ne.s32.totalorder %s3594_s29, %s3590_s28 }
  0x1a   : > { %p3755_p1 = scmp.eq.s32.totalorder %s2540_s19, 0  ;;  %p340_p2 = scmp.ne.s32.totalorder %s3586_s27, %s3582_s26 }
  0x1b   : > { %p341_p4 = scmp.eq.s32.totalorder %s2540_s19, 3  ;;  %p346_p5 = scmp.ne.s32.totalorder %s3582_s26, %s3578_s25 }
  0x1c   : > { %p3764_p3 = por %p3755_p1, %p63_p0  ;;  %p347_p6 = scmp.eq.s32.totalorder %s2541_s20, 3 }
  0x1d   : > { %p3770_p7 = por %p341_p4, %p340_p2  ;;  %p2542_p8 = scmp.ge.s32.totalorder %s3618_s18, 1 }
  0x1e   : > { %p3775_p9 = por %p347_p6, %p346_p5  ;;  %p354_p10 = scmp.lt.s32.totalorder %s3618_s18, 5 }
  0x1f   : > { %s4699_s24 = scalar_select %p3770_p7, 1, 0 }
  0x20   : > { %s4701_s28 = scalar_select %p3775_p9, 1, 0 }
  0x21   : > { %4700 = sst [smem:[#allocation22_spill]] %s4699_s24  ;;  %p3783_p11 = pnand %p2542_p8, %p354_p10 }
  0x22   : > { %4702 = sst [smem:[#allocation23_spill]] %s4701_s28  ;;  %s3620_s19 = smov [#allocation9]  }
  0x23   : > { %s4703_s1 = sld [smem:[#allocation25_spill]]  ;;  %p3125_p12 = pneg %p3783_p11 }
  0x24   : > { %s368_s20 = sshll.u32 %s3620_s19, 4  ;;  %s4705_s7 = sld [smem:[#allocation29_spill]]  ;;  %s369_s20 = int_to_ptr.vmem [resolvable:$true] %s368_s20 }
  0x25   : > { %p3794_p13 = pnand %p3125_p12, %p3755_p1  ;;  %s3621_s22 = smov [#allocation11]  }
  0x26   : > { %s3622_s25 = smov 64   ;;  %s3623_s24 = smov 4  }
  0x27   : > { %s4707_s8 = sld [smem:[#allocation30_spill]]  ;;  %s3624_s5 = smov [#allocation12]  }
  0x28   : > { %s50_s11 = sadd.s32 1, %s3598_s30  ;;  %p57_p2 = scmp.ne.s32.totalorder %s3598_s30, %s3594_s29 }
  0x29   : > { %s366_s15 = sshll.u32 %s4703_s1, 4  ;;  %s394_s1 = sshll.u32 %s3621_s22, 4  ;;  %s367_s15 = int_to_ptr.hbm [resolvable:$true] %s366_s15  ;;  %s395_s1 = int_to_ptr.vmem [resolvable:$true] %s394_s1 }
  0x2a   : > { %s392_s28 = sshll.u32 %s4705_s7, 4  ;;  %s408_s22 = sshll.u32 %s3624_s5, 4  ;;  %s393_s28 = int_to_ptr.hbm [resolvable:$true] %s392_s28  ;;  %s409_s22 = int_to_ptr.vmem [resolvable:$true] %s408_s22 }
  0x2b   : > { %3128 = dma.hbm_to_vmem [thread:$0]  (!%p3794_p13), %s367_s15, 16, %s369_s20, [#allocation10]  }
  0x2c   : > { %3131 = dma.hbm_to_vmem [thread:$0]  (!%p3794_p13), %s393_s28, 1024, %s395_s1, [#allocation10], %s3622_s25, %s3622_s25, %s3623_s24  }
  0x2d   : > { %s406_s9 = sshll.u32 %s4707_s8, 4  ;;  %s40_s15 = sadd.s32 1, %s3610_s16  ;;  %s407_s9 = int_to_ptr.hbm [resolvable:$true] %s406_s9 }
  0x2e   : > { %3134 = dma.hbm_to_vmem [thread:$0]  (!%p3794_p13), %s407_s9, 1024, %s409_s22, [#allocation13], %s3622_s25, %s3622_s25, %s3623_s24  }
  0x2f   : > { %p41_p0 = scmp.ge.s32.totalorder %s40_s15, 2  ;;  %s43_s20 = sadd.s32 1, %s3614_s17 }
  0x30   : > { %p58_p4 = scmp.eq.s32.totalorder %s3618_s18, 0  ;;  %p3146_p6 = scmp.lt.s32.totalorder %s3618_s18, 4 }
  0x31   : > { %s4735_s15 = smov (%p41_p0, %s40_s15), 0  ;;  %s4737_s20 = smov (!%p41_p0, %s43_s20), %s3614_s17 }
  0x32   : > { %4708 = sst [smem:[#allocation24_spill]] %s4735_s15  ;;  %s326_s1 = ssub.s32 %s3610_s16, %s4735_s15 }
  0x33   : > { %p45_p5 = scmp.ge.s32.totalorder %s4737_s20, 2  ;;  %p3819_p8 = por %p58_p4, %p57_p2 }
  0x34   : > { %s434_s7 = sand.u32 1, %s3598_s30   ;;  %s2822_s25 = sshll.u32 %s3614_s17, 8 }
  0x35   : > { %s4739_s20 = smov (%p45_p5, %s4737_s20), 0  ;;  %s2547_s9 = sshll.u32 %s434_s7, 8 }
  0x36   : > { %s47_s28 = ssub.s32 %s3614_s17, %s4739_s20  ;;  %s4710_s19 = sadd.s32 1, %s3586_s27 }
  0x37   : > { %p48_p10 = scmp.eq.s32.totalorder %s47_s28, 0  ;;  %s327_s13 = sor.u32 %s326_s1, %s47_s28 }
  0x38   : > { %p328_p12 = scmp.eq.s32.totalorder %s327_s13, 0  ;;  %s443_s16 = scalar_lea.hbm %s4660_s0, %s2822_s25 }
  0x39   : > { %s3830_s24 = scalar_select %p48_p10, %s3598_s30, %s50_s11  }
  0x3a   : > { %s3835_s22 = scalar_select %p328_p12, %s3586_s27, %s4710_s19  }
  0x3b   : > { %s438_s10 = scalar_lea.vmem [#allocation6], %s2547_s9  ;;  %s444_s6 = sshll.u32 %s443_s16, 4  ;;  %s445_s6 = int_to_ptr.hbm [resolvable:$true] %s444_s6 }
  0x3c   : > { %s446_s2 = sshll.u32 %s438_s10, 4  ;;  %p3136_p13 = pnand %p3146_p6, %p3819_p8  ;;  %s447_s2 = int_to_ptr.vmem [resolvable:$true] %s446_s2 }
  0x3d   : > { %s435_s1 = scalar_lea.sflag [#allocation7], %s434_s7  ;;  %s3625_s28 = smov 128  }
  0x3e   : > { %s3626_s13 = smov 8   ;;  %458 = sbr.rel (%p3783_p11) target bundleno = 1917 (0x77d), region = 72 }
  0x3f   : > { %3138 = dma.hbm_to_vmem [thread:$0]  (!%p3136_p13), %s445_s6, 4096, %s447_s2, %s435_s1, %s3625_s28, %s3625_s28, %s3626_s13  }
  0x40   : > { %s460_s11 = sand.u32 (!%p3783_p11), 1, %s3594_s29  }
  0x41   : > { %s2551_s8 = sshll.u32 (!%p3783_p11), %s460_s11, 8  ;;  %s461_s15 = scalar_lea.sflag (!%p3783_p11), [#allocation7], %s460_s11 }
  0x42   : > { %s3847_s9 = scalar_lea.vmem (!%p3783_p11), [#allocation6], %s2551_s8 }
  0x43   : > { %3561 = dma.done.wait (%p3764_p3), %s461_s15, 4096  }
  0x44   : > { %3563 = vsyncadd (%p3764_p3), %s461_s15, 4294963200 }
  0x45   : > { %3565 = dma.done.wait (%p3755_p1), [#allocation10], 1040  }
  0x46   : > { %3567 = vsyncadd (%p3755_p1), [#allocation10], 4294966256 }
  0x47   : > { %3569 = dma.done.wait (%p3755_p1), [#allocation13], 1024  }
  0x48   : > { %3571 = vsyncadd (%p3755_p1), [#allocation13], 4294966272  ;;  %s520_s2 = sand.u32 1, %s3582_s26   ;;  %p2556_p3 = scmp.ne.s32.totalorder %s3602_s14, 0 }
  0x49   : > { %s2555_s6 = sshll.u32 %s520_s2, 7  ;;  %s4711_s25 = sld [smem:[#allocation28_spill]] (!%p2556_p3) }
  0x4a   : > { %s3864_s10 = scalar_lea.vmem [#allocation14], %s2555_s6  ;;  %527 = sbr.rel (%p2556_p3) target bundleno = 1062 (0x426), region = 92 }
  0x4b   : > { %s4713_s13 = sld [smem:[#allocation26_spill]] (!%p2556_p3) }
  0x4c   : > { %s4714_s15 = sld [smem:[#allocation32_spill]] (!%p2556_p3) }
  0x4d   : > { %s4715_s16 = sld [smem:[#allocation33_spill]] (!%p2556_p3) }
  0x4f   : > { %v576_v0 = vld [vmem:[%s4664_s4 + $0x78] sm:$0xff]  ;;  %v575_v1 = vld [vmem:[%s4664_s4 + $0x70] sm:$0xff]  ;;  %v574_v2 = vld [vmem:[%s4664_s4 + $0x68] sm:$0xff]  ;;  %vm635_vm0 = vcmask 64512   ;;  %s4712_s19 = smov %s4711_s25 }
  0x50   : > { %614 = vmatpush.msra.mxu0 %v576_v0  ;;  %761 = vmatpush.msra.mxu2 %v576_v0  ;;  %v573_v3 = vld [vmem:[%s4664_s4 + $0x60] sm:$0xff]  ;;  %v3883_v5 = vld [vmem:[%s3847_s9 + $0x8] sm:$0xff]  ;;  %v572_v6 = vld [vmem:[%s4664_s4 + $0x58] sm:$0xff] }
  0x51   : > { %v3880_v4 = vld [vmem:[%s3847_s9] sm:$0xff]  ;;  %v3889_v7 = vld [vmem:[%s3847_s9 + $0x10] sm:$0xff]  ;;  %v3894_v9 = vld [vmem:[%s3847_s9 + $0x18] sm:$0xff] }
  0x52   : > { %615 = vmatpush.msra.mxu0 %v575_v1  ;;  %762 = vmatpush.msra.mxu2 %v575_v1  ;;  %v577_v8 = vadd.f32 %v3883_v5, %v3880_v4  ;;  %v571_v10 = vld [vmem:[%s4664_s4 + $0x50] sm:$0xff]  ;;  %v3901_v12 = vld [vmem:[%s3847_s9 + $0x20] sm:$0xff]  ;;  %v568_v19 = vld [vmem:[%s4664_s4 + $0x38] sm:$0xff] }
  0x53   : > { %v570_v13 = vld [vmem:[%s4664_s4 + $0x48] sm:$0xff]  ;;  %v569_v16 = vld [vmem:[%s4664_s4 + $0x40] sm:$0xff]  ;;  %v3915_v18 = vld [vmem:[%s3847_s9 + $0x30] sm:$0xff] }
  0x54   : > { %616 = vmatpush.msra.mxu0 %v574_v2  ;;  %763 = vmatpush.msra.mxu2 %v574_v2  ;;  %v578_v11 = vadd.f32 %v577_v8, %v3889_v7  ;;  %v3908_v15 = vld [vmem:[%s3847_s9 + $0x28] sm:$0xff]  ;;  %v3922_v21 = vld [vmem:[%s3847_s9 + $0x38] sm:$0xff]  ;;  %v3929_v24 = vld [vmem:[%s3847_s9 + $0x40] sm:$0xff] }
  0x55   : > { %v567_v22 = vld [vmem:[%s4664_s4 + $0x30] sm:$0xff]  ;;  %v566_v25 = vld [vmem:[%s4664_s4 + $0x28] sm:$0xff]  ;;  %v565_v28 = vld [vmem:[%s4664_s4 + $0x20] sm:$0xff] }
  0x56   : > { %617 = vmatpush.msra.mxu0 %v573_v3  ;;  %764 = vmatpush.msra.mxu2 %v573_v3  ;;  %v579_v14 = vadd.f32 %v578_v11, %v3894_v9  ;;  %v3936_v27 = vld [vmem:[%s3847_s9 + $0x48] sm:$0xff]  ;;  %v3943_v30 = vld [vmem:[%s3847_s9 + $0x50] sm:$0xff]  ;;  %v3950_v33 = vld [vmem:[%s3847_s9 + $0x58] sm:$0xff] }
  0x57   : > { %v564_v31 = vld [vmem:[%s4664_s4 + $0x18] sm:$0xff]  ;;  %v563_v34 = vld [vmem:[%s4664_s4 + $0x10] sm:$0xff]  ;;  %v3957_v36 = vld [vmem:[%s3847_s9 + $0x60] sm:$0xff] }
  0x58   : > { %618 = vmatpush.msra.mxu0 %v572_v6  ;;  %765 = vmatpush.msra.mxu2 %v572_v6  ;;  %v580_v17 = vadd.f32 %v579_v14, %v3901_v12  ;;  %v562_v37 = vld [vmem:[%s4664_s4 + $0x8] sm:$0xff]  ;;  %v561_v40 = vld [vmem:[%s4664_s4] sm:$0xff]  ;;  %v3971_v42 = vld [vmem:[%s3847_s9 + $0x70] sm:$0xff] }
  0x59   : > { %v3964_v39 = vld [vmem:[%s3847_s9 + $0x68] sm:$0xff]  ;;  %v3975_v44 = vld [vmem:[%s3847_s9 + $0x78] sm:$0xff]  ;;  %v3979_v46 = vld [vmem:[%s3847_s9 + $0x80] sm:$0xff] }
  0x5a   : > { %619 = vmatpush.msra.mxu0 %v571_v10  ;;  %766 = vmatpush.msra.mxu2 %v571_v10  ;;  %v581_v20 = vadd.f32 %v580_v17, %v3908_v15  ;;  %v3983_v48 = vld [vmem:[%s3847_s9 + $0x88] sm:$0xff]  ;;  %v3987_v50 = vld [vmem:[%s3847_s9 + $0x90] sm:$0xff]  ;;  %v3991_v52 = vld [vmem:[%s3847_s9 + $0x98] sm:$0xff] }
  0x5b   : > { %v3995_v54 = vld [vmem:[%s3847_s9 + $0xa0] sm:$0xff]  ;;  %v3999_v56 = vld [vmem:[%s3847_s9 + $0xa8] sm:$0xff]  ;;  %v4003_v58 = vld [vmem:[%s3847_s9 + $0xb0] sm:$0xff] }
  0x5c   : > { %620 = vmatpush.msra.mxu0 %v570_v13  ;;  %767 = vmatpush.msra.mxu2 %v570_v13  ;;  %v582_v23 = vadd.f32 %v581_v20, %v3915_v18  ;;  %v4007_v60 = vld [vmem:[%s3847_s9 + $0xb8] sm:$0xff]  ;;  %v4011_v62 = vld [vmem:[%s3847_s9 + $0xc0] sm:$0xff]  ;;  %v4015_v0 = vld [vmem:[%s3847_s9 + $0xc8] sm:$0xff] }
  0x5d   : > { %v4019_v2 = vld [vmem:[%s3847_s9 + $0xd0] sm:$0xff]  ;;  %v4023_v6 = vld [vmem:[%s3847_s9 + $0xd8] sm:$0xff]  ;;  %v4027_v10 = vld [vmem:[%s3847_s9 + $0xe0] sm:$0xff] }
  0x5e   : > { %621 = vmatpush.msra.mxu0 %v569_v16  ;;  %768 = vmatpush.msra.mxu2 %v569_v16  ;;  %v583_v26 = vadd.f32 %v582_v23, %v3922_v21  ;;  %v4031_v13 = vld [vmem:[%s3847_s9 + $0xe8] sm:$0xff]  ;;  %v4035_v16 = vld [vmem:[%s3847_s9 + $0xf0] sm:$0xff] }
  0x60   : > { %622 = vmatpush.msra.mxu0 %v568_v19  ;;  %769 = vmatpush.msra.mxu2 %v568_v19  ;;  %v584_v29 = vadd.f32 %v583_v26, %v3929_v24  ;;  %v4039_v19 = vld [vmem:[%s3847_s9 + $0xf8] sm:$0xff] }
  0x62   : > { %623 = vmatpush.msra.mxu0 %v567_v22  ;;  %770 = vmatpush.msra.mxu2 %v567_v22  ;;  %v585_v32 = vadd.f32 %v584_v29, %v3936_v27 }
  0x64   : > { %624 = vmatpush.msra.mxu0 %v566_v25  ;;  %771 = vmatpush.msra.mxu2 %v566_v25  ;;  %v586_v35 = vadd.f32 %v585_v32, %v3943_v30  ;;  %v560_v32 = vld [vmem:[%s4663_s3] sm:$0xff] }
  0x65   : > { %654 = vmatpush.msra.mxu1 %v560_v32  ;;  %800 = vmatpush.msra.mxu3 %v560_v32 }
  0x66   : > { %625 = vmatpush.msra.mxu0 %v565_v28  ;;  %772 = vmatpush.msra.mxu2 %v565_v28  ;;  %v587_v38 = vadd.f32 %v586_v35, %v3950_v33 }
  0x68   : > { %626 = vmatpush.msra.mxu0 %v564_v31  ;;  %773 = vmatpush.msra.mxu2 %v564_v31  ;;  %v588_v41 = vadd.f32 %v587_v38, %v3957_v36 }
  0x6a   : > { %627 = vmatpush.msra.mxu0 %v563_v34  ;;  %774 = vmatpush.msra.mxu2 %v563_v34  ;;  %v589_v43 = vadd.f32 %v588_v41, %v3964_v39 }
  0x6c   : > { %628 = vmatpush.msra.mxu0 %v562_v37  ;;  %775 = vmatpush.msra.mxu2 %v562_v37  ;;  %v590_v45 = vadd.f32 %v589_v43, %v3971_v42 }
  0x6e   : > { %629 = vmatpush.msra.mxu0 %v561_v40  ;;  %776 = vmatpush.msra.mxu2 %v561_v40  ;;  %v591_v47 = vadd.f32 %v590_v45, %v3975_v44 }
  0x70   : > { %v592_v49 = vadd.f32 %v591_v47, %v3979_v46 }
  0x72   : > { %v593_v51 = vadd.f32 %v592_v49, %v3983_v48 }
  0x74   : > { %v594_v53 = vadd.f32 %v593_v51, %v3987_v50 }
  0x76   : > { %v595_v55 = vadd.f32 %v594_v53, %v3991_v52 }
  0x78   : > { %v596_v57 = vadd.f32 %v595_v55, %v3995_v54 }
  0x7a   : > { %v597_v59 = vadd.f32 %v596_v57, %v3999_v56 }
  0x7c   : > { %v598_v61 = vadd.f32 %v597_v59, %v4003_v58 }
  0x7e   : > { %v599_v63 = vadd.f32 %v598_v61, %v4007_v60 }
  0x80   : > { %v600_v1 = vadd.f32 %v599_v63, %v4011_v62 }
  0x82   : > { %v601_v3 = vadd.f32 %v600_v1, %v4015_v0 }
  0x84   : > { %v602_v8 = vadd.f32 %v601_v3, %v4019_v2 }
  0x86   : > { %v603_v11 = vadd.f32 %v602_v8, %v4023_v6 }
  0x88   : > { %v604_v14 = vadd.f32 %v603_v11, %v4027_v10 }
  0x8a   : > { %v605_v17 = vadd.f32 %v604_v14, %v4031_v13 }
  0x8c   : > { %v606_v20 = vadd.f32 %v605_v17, %v4035_v16 }
  0x8e   : > { %v607_v22 = vadd.f32 %v606_v20, %v4039_v19 }
  0x90   : > { %v608_v23 = vrot.slane %v607_v22, 4 }
  0x92   : > { %v609_v25 = vadd.f32 %v608_v23, %v607_v22 }
  0x94   : > { %v610_v26 = vrot.slane %v609_v25, 2 }
  0x96   : > { %v611_v28 = vadd.f32 %v610_v26, %v609_v25 }
  0x98   : > { %v612_v29 = vrot.slane %v611_v28, 1 }
  0x9a   : > { %v613_v31 = vadd.f32 %v612_v29, %v611_v28 }
  0x9c   : > { %630 = vmatmul.f32.vlgmr.msra.gmra.mxu0 %v613_v31 }
 0x119   : > { %v631_v34 = vpop.f32.mrf.mxu0 }
 0x11a   : > { %v634_v35 = vmul.f32 0.0009765625, %v631_v34 }
 0x11c   : > { %2557 = vmatmul.msk.f32.vlgmr.msra.gmra.mxu1 %vm635_vm0, %v634_v35 }
 0x199   : > { %v4047_v37 = vpop.f32.mrf.mxu1 }
 0x19a   : > { %v4050_v38 = vperm.slane %v4047_v37, 0 }
 0x19c   : > { %v660_v40 = vsub.f32 %v3880_v4, %v4050_v38  ;;  %v661_v41 = vsub.f32 %v3883_v5, %v4050_v38  ;;  %v662_v43 = vsub.f32 %v3889_v7, %v4050_v38  ;;  %v663_v49 = vsub.f32 %v3894_v9, %v4050_v38 }
 0x19d   : > { %v664_v51 = vsub.f32 %v3901_v12, %v4050_v38  ;;  %v665_v57 = vsub.f32 %v3908_v15, %v4050_v38  ;;  %v666_v63 = vsub.f32 %v3915_v18, %v4050_v38  ;;  %v667_v8 = vsub.f32 %v3922_v21, %v4050_v38 }
 0x19e   : > { %v692_v45 = vmul.f32 %v660_v40, %v660_v40  ;;  %v693_v47 = vmul.f32 %v661_v41, %v661_v41  ;;  %v694_v53 = vmul.f32 %v662_v43, %v662_v43  ;;  %v695_v59 = vmul.f32 %v663_v49, %v663_v49 }
 0x19f   : > { %v696_v1 = vmul.f32 %v664_v51, %v664_v51  ;;  %v697_v11 = vmul.f32 %v665_v57, %v665_v57  ;;  %v668_v17 = vsub.f32 %v3929_v24, %v4050_v38  ;;  %v698_v20 = vmul.f32 %v666_v63, %v666_v63 }
 0x1a0   : > { %v724_v55 = vadd.f32 %v693_v47, %v692_v45  ;;  %v669_v23 = vsub.f32 %v3936_v27, %v4050_v38  ;;  %v699_v25 = vmul.f32 %v667_v8, %v667_v8  ;;  %v670_v28 = vsub.f32 %v3943_v30, %v4050_v38 }
 0x1a1   : > { %v700_v29 = vmul.f32 %v668_v17, %v668_v17  ;;  %v671_v32 = vsub.f32 %v3950_v33, %v4050_v38  ;;  %v672_v40 = vsub.f32 %v3957_v36, %v4050_v38  ;;  %v673_v45 = vsub.f32 %v3964_v39, %v4050_v38 }
 0x1a2   : > { %v725_v61 = vadd.f32 %v724_v55, %v694_v53  ;;  %v701_v34 = vmul.f32 %v669_v23, %v669_v23  ;;  %v702_v41 = vmul.f32 %v670_v28, %v670_v28  ;;  %v674_v51 = vsub.f32 %v3971_v42, %v4050_v38 }
 0x1a3   : > { %v703_v47 = vmul.f32 %v671_v32, %v671_v32  ;;  %v704_v53 = vmul.f32 %v672_v40, %v672_v40  ;;  %v675_v57 = vsub.f32 %v3975_v44, %v4050_v38  ;;  %v676_v63 = vsub.f32 %v3979_v46, %v4050_v38 }
 0x1a4   : > { %v726_v3 = vadd.f32 %v725_v61, %v695_v59  ;;  %v705_v59 = vmul.f32 %v673_v45, %v673_v45  ;;  %v677_v8 = vsub.f32 %v3983_v48, %v4050_v38  ;;  %v678_v17 = vsub.f32 %v3987_v50, %v4050_v38 }
 0x1a5   : > { %v679_v23 = vsub.f32 %v3991_v52, %v4050_v38  ;;  %v680_v28 = vsub.f32 %v3995_v54, %v4050_v38  ;;  %v681_v32 = vsub.f32 %v3999_v56, %v4050_v38  ;;  %v682_v40 = vsub.f32 %v4003_v58, %v4050_v38 }
 0x1a6   : > { %v727_v14 = vadd.f32 %v726_v3, %v696_v1  ;;  %v706_v1 = vmul.f32 %v674_v51, %v674_v51  ;;  %v683_v45 = vsub.f32 %v4007_v60, %v4050_v38  ;;  %v684_v51 = vsub.f32 %v4011_v62, %v4050_v38 }
 0x1a8   : > { %v728_v22 = vadd.f32 %v727_v14, %v697_v11  ;;  %v707_v11 = vmul.f32 %v675_v57, %v675_v57  ;;  %v685_v57 = vsub.f32 %v4015_v0, %v4050_v38 }
 0x1aa   : > { %v729_v26 = vadd.f32 %v728_v22, %v698_v20  ;;  %v708_v20 = vmul.f32 %v676_v63, %v676_v63  ;;  %v686_v63 = vsub.f32 %v4019_v2, %v4050_v38 }
 0x1ac   : > { %v730_v31 = vadd.f32 %v729_v26, %v699_v25  ;;  %v709_v25 = vmul.f32 %v677_v8, %v677_v8  ;;  %v687_v8 = vsub.f32 %v4023_v6, %v4050_v38 }
 0x1ae   : > { %v731_v35 = vadd.f32 %v730_v31, %v700_v29  ;;  %v710_v29 = vmul.f32 %v678_v17, %v678_v17  ;;  %v688_v17 = vsub.f32 %v4027_v10, %v4050_v38 }
 0x1b0   : > { %v732_v43 = vadd.f32 %v731_v35, %v701_v34  ;;  %v711_v34 = vmul.f32 %v679_v23, %v679_v23  ;;  %v689_v23 = vsub.f32 %v4031_v13, %v4050_v38 }
 0x1b2   : > { %v733_v49 = vadd.f32 %v732_v43, %v702_v41  ;;  %v712_v41 = vmul.f32 %v680_v28, %v680_v28  ;;  %v690_v28 = vsub.f32 %v4035_v16, %v4050_v38 }
 0x1b4   : > { %v734_v55 = vadd.f32 %v733_v49, %v703_v47  ;;  %v713_v47 = vmul.f32 %v681_v32, %v681_v32  ;;  %v691_v32 = vsub.f32 %v4039_v19, %v4050_v38  ;;  %v2830_v38 = vld [vmem:[%s4711_s25 + $0x38] sm:$0xff] }
 0x1b5   : > { %974 = vmatpush.bf16.msrb.mxu0 %v2830_v38  ;;  %3077 = vmatpush.bf16.msrb.mxu1 %v2830_v38 }
 0x1b6   : > { %v735_v61 = vadd.f32 %v734_v55, %v704_v53  ;;  %v714_v53 = vmul.f32 %v682_v40, %v682_v40  ;;  %v722_v40 = vmul.f32 %v690_v28, %v690_v28  ;;  %v2824_v28 = vld [vmem:[%s4712_s19 + $0x8] sm:$0xff] }
 0x1b8   : > { %v736_v3 = vadd.f32 %v735_v61, %v705_v59  ;;  %v715_v59 = vmul.f32 %v683_v45, %v683_v45 }
 0x1ba   : > { %v737_v14 = vadd.f32 %v736_v3, %v706_v1  ;;  %v716_v1 = vmul.f32 %v684_v51, %v684_v51 }
 0x1bc   : > { %v738_v22 = vadd.f32 %v737_v14, %v707_v11  ;;  %v717_v11 = vmul.f32 %v685_v57, %v685_v57 }
 0x1be   : > { %v739_v26 = vadd.f32 %v738_v22, %v708_v20  ;;  %v718_v20 = vmul.f32 %v686_v63, %v686_v63 }
 0x1c0   : > { %v740_v31 = vadd.f32 %v739_v26, %v709_v25  ;;  %v719_v25 = vmul.f32 %v687_v8, %v687_v8  ;;  %v2837_v8 = vld [vmem:[#allocation11 + $0x30] sm:$0xff] }
 0x1c2   : > { %v741_v35 = vadd.f32 %v740_v31, %v710_v29  ;;  %v720_v29 = vmul.f32 %v688_v17, %v688_v17  ;;  %v2827_v17 = vld [vmem:[%s4712_s19 + $0x20] sm:$0xff] }
 0x1c4   : > { %v742_v43 = vadd.f32 %v741_v35, %v711_v34  ;;  %v721_v34 = vmul.f32 %v689_v23, %v689_v23  ;;  %v2834_v23 = vld [vmem:[#allocation11 + $0x18] sm:$0xff] }
 0x1c6   : > { %v743_v49 = vadd.f32 %v742_v43, %v712_v41  ;;  %v723_v43 = vmul.f32 %v691_v32, %v691_v32  ;;  %v2831_v32 = vld [vmem:[#allocation11] sm:$0xff] }
 0x1c8   : > { %v744_v55 = vadd.f32 %v743_v49, %v713_v47 }
 0x1ca   : > { %v745_v61 = vadd.f32 %v744_v55, %v714_v53 }
 0x1cc   : > { %v746_v3 = vadd.f32 %v745_v61, %v715_v59 }
 0x1ce   : > { %v747_v14 = vadd.f32 %v746_v3, %v716_v1  ;;  %v2838_v1 = vld [vmem:[#allocation11 + $0x38] sm:$0xff]  ;;  %v2829_v3 = vld [vmem:[%s4712_s19 + $0x30] sm:$0xff] }
 0x1cf   : > { %1131 = vmatpush.bf16.msrb.mxu2 %v2838_v1  ;;  %3085 = vmatpush.bf16.msrb.mxu3 %v2838_v1 }
 0x1d0   : > { %v748_v22 = vadd.f32 %v747_v14, %v717_v11  ;;  %975 = vmatpush.bf16.msrb.mxu0 %v2829_v3  ;;  %3078 = vmatpush.bf16.msrb.mxu1 %v2829_v3  ;;  %v2828_v11 = vld [vmem:[%s4712_s19 + $0x28] sm:$0xff] }
 0x1d1   : > { %v2836_v14 = vld [vmem:[#allocation11 + $0x28] sm:$0xff] }
 0x1d2   : > { %v749_v26 = vadd.f32 %v748_v22, %v718_v20  ;;  %v2835_v20 = vld [vmem:[#allocation11 + $0x20] sm:$0xff]  ;;  %v2826_v22 = vld [vmem:[%s4712_s19 + $0x18] sm:$0xff] }
 0x1d3   : > { %1132 = vmatpush.bf16.msrb.mxu2 %v2837_v8  ;;  %3086 = vmatpush.bf16.msrb.mxu3 %v2837_v8 }
 0x1d4   : > { %v750_v31 = vadd.f32 %v749_v26, %v719_v25  ;;  %976 = vmatpush.bf16.msrb.mxu0 %v2828_v11  ;;  %3079 = vmatpush.bf16.msrb.mxu1 %v2828_v11  ;;  %v2825_v25 = vld [vmem:[%s4712_s19 + $0x10] sm:$0xff] }
 0x1d5   : > { %v2833_v26 = vld [vmem:[#allocation11 + $0x10] sm:$0xff] }
 0x1d6   : > { %v751_v35 = vadd.f32 %v750_v31, %v720_v29  ;;  %v2832_v29 = vld [vmem:[#allocation11 + $0x8] sm:$0xff]  ;;  %v2823_v31 = vld [vmem:[%s4712_s19] sm:$0xff] }
 0x1d7   : > { %1133 = vmatpush.bf16.msrb.mxu2 %v2836_v14  ;;  %3087 = vmatpush.bf16.msrb.mxu3 %v2836_v14 }
 0x1d8   : > { %v752_v41 = vadd.f32 %v751_v35, %v721_v34  ;;  %977 = vmatpush.bf16.msrb.mxu0 %v2827_v17  ;;  %3080 = vmatpush.bf16.msrb.mxu1 %v2827_v17 }
 0x1da   : > { %v753_v45 = vadd.f32 %v752_v41, %v722_v40 }
 0x1db   : > { %1134 = vmatpush.bf16.msrb.mxu2 %v2835_v20  ;;  %3088 = vmatpush.bf16.msrb.mxu3 %v2835_v20 }
 0x1dc   : > { %v754_v47 = vadd.f32 %v753_v45, %v723_v43  ;;  %978 = vmatpush.bf16.msrb.mxu0 %v2826_v22  ;;  %3081 = vmatpush.bf16.msrb.mxu1 %v2826_v22 }
 0x1de   : > { %v755_v49 = vrot.slane %v754_v47, 4 }
 0x1df   : > { %1135 = vmatpush.bf16.msrb.mxu2 %v2834_v23  ;;  %3089 = vmatpush.bf16.msrb.mxu3 %v2834_v23 }
 0x1e0   : > { %v756_v51 = vadd.f32 %v755_v49, %v754_v47  ;;  %979 = vmatpush.bf16.msrb.mxu0 %v2825_v25  ;;  %3082 = vmatpush.bf16.msrb.mxu1 %v2825_v25 }
 0x1e2   : > { %v757_v53 = vrot.slane %v756_v51, 2 }
 0x1e3   : > { %1136 = vmatpush.bf16.msrb.mxu2 %v2833_v26  ;;  %3090 = vmatpush.bf16.msrb.mxu3 %v2833_v26 }
 0x1e4   : > { %v758_v55 = vadd.f32 %v757_v53, %v756_v51  ;;  %980 = vmatpush.bf16.msrb.mxu0 %v2824_v28  ;;  %3083 = vmatpush.bf16.msrb.mxu1 %v2824_v28  ;;  %v815_v51 = vld [vmem:[#allocation9] sm:$0x1] }
 0x1e6   : > { %v759_v57 = vrot.slane %v758_v55, 1 }
 0x1e7   : > { %1137 = vmatpush.bf16.msrb.mxu2 %v2832_v29  ;;  %3091 = vmatpush.bf16.msrb.mxu3 %v2832_v29 }
 0x1e8   : > { %v760_v59 = vadd.f32 %v759_v57, %v758_v55  ;;  %981 = vmatpush.bf16.msrb.mxu0 %v2823_v31  ;;  %3084 = vmatpush.bf16.msrb.mxu1 %v2823_v31  ;;  %v817_v57 = vld [vmem:[%s4713_s13] sm:$0x1] }
 0x1ea   : > { %777 = vmatmul.f32.vlgmr.msra.gmra.mxu2 %v760_v59 }
 0x1eb   : > { %1138 = vmatpush.bf16.msrb.mxu2 %v2831_v32  ;;  %3092 = vmatpush.bf16.msrb.mxu3 %v2831_v32 }
 0x26d   : > { %v778_v61 = vpop.f32.mrf.mxu2 }
 0x26e   : > { %v781_v63 = vmul.f32 0.0009765625, %v778_v61 }
 0x270   : > { %2558 = vmatmul.msk.f32.vlgmr.msra.gmra.mxu3 %vm635_vm0, %v781_v63 }
 0x2f3   : > { %v802_v34 = vpop.f32.mrf.mxu3 }
 0x2f4   : > { %v803_v35 = vadd.f32 1e-05, %v802_v34 }
 0x2f6   : > { %3250 = vrsqrt.f32 %v803_v35  ;;  %vm811_vm2 = vweird.f32 %v803_v35 }
 0x2fc   : > { %v3251_v40 = vpop.eup %3250 }
 0x2fd   : > { %v806_v41 = vmul.f32 %v3251_v40, %v803_v35  ;;  %vm812_vm1 = vweird.f32 %v3251_v40 }
 0x2fe   : > { %vm813_vm3 = vmor %vm811_vm2, %vm812_vm1 }
 0x2ff   : > { %v807_v43 = vmul.f32 %v3251_v40, %v806_v41 }
 0x301   : > { %v808_v45 = vmul.f32 0.5, %v807_v43 }
 0x303   : > { %v809_v47 = vsub.f32 1.5, %v808_v45 }
 0x305   : > { %v810_v49 = vmul.f32 %v3251_v40, %v809_v47 }
 0x307   : > { %v814_v53 = vsel %vm813_vm3, %v3251_v40, %v810_v49 }
 0x308   : > { %v816_v55 = vmul.f32 %v815_v51, %v814_v53 }
 0x30a   : > { %v818_v59 = vmul.f32 %v816_v55, %v4047_v37  ;;  %820 = vst [vmem:[#allocation4] sm:$0x1] %v816_v55  ;;  %v4145_v61 = vperm.slane %v816_v55, 0 }
 0x30c   : > { %v819_v63 = vsub.f32 %v817_v57, %v818_v59  ;;  %v823_v38 = vmul.f32 %v4145_v61, %v3880_v4  ;;  %v824_v3 = vmul.f32 %v4145_v61, %v3883_v5  ;;  %v837_v8 = vmul.f32 %v4145_v61, %v3971_v42 }
 0x30d   : > { %v838_v11 = vmul.f32 %v4145_v61, %v3975_v44  ;;  %v825_v5 = vmul.f32 %v4145_v61, %v3889_v7  ;;  %v826_v42 = vmul.f32 %v4145_v61, %v3894_v9  ;;  %v839_v44 = vmul.f32 %v4145_v61, %v3979_v46 }
 0x30e   : > { %821 = vst [vmem:[#allocation5] sm:$0x1] %v819_v63  ;;  %v4149_v1 = vperm.slane %v819_v63, 0  ;;  %v840_v23 = vmul.f32 %v4145_v61, %v3983_v48  ;;  %v831_v26 = vmul.f32 %v4145_v61, %v3929_v24  ;;  %v832_v28 = vmul.f32 %v4145_v61, %v3936_v27 }
 0x30f   : > { %v845_v7 = vmul.f32 %v4145_v61, %v4003_v58  ;;  %v846_v46 = vmul.f32 %v4145_v61, %v4007_v60  ;;  %v833_v48 = vmul.f32 %v4145_v61, %v3943_v30  ;;  %v834_v27 = vmul.f32 %v4145_v61, %v3950_v33 }
 0x310   : > { %v858_v37 = vadd.f32 %v4149_v1, %v823_v38  ;;  %v859_v14 = vadd.f32 %v4149_v1, %v824_v3  ;;  %v872_v17 = vadd.f32 %v4149_v1, %v837_v8  ;;  %v873_v4 = vadd.f32 %v4149_v1, %v838_v11 }
 0x311   : > { %v860_v25 = vadd.f32 %v4149_v1, %v825_v5  ;;  %v861_v29 = vadd.f32 %v4149_v1, %v826_v42  ;;  %v874_v9 = vadd.f32 %v4149_v1, %v839_v44  ;;  %v866_v31 = vadd.f32 %v4149_v1, %v831_v26 }
 0x312   : > { %v890_v20 = vpack.c.bf16 %v859_v14, %v858_v37  ;;  %v897_v22 = vpack.c.bf16 %v873_v4, %v872_v17  ;;  %v867_v24 = vadd.f32 %v4149_v1, %v832_v28  ;;  %v880_v32 = vadd.f32 %v4149_v1, %v845_v7 }
 0x313   : > { %v875_v58 = vadd.f32 %v4149_v1, %v840_v23  ;;  %v881_v34 = vadd.f32 %v4149_v1, %v846_v46  ;;  %v868_v35 = vadd.f32 %v4149_v1, %v833_v48  ;;  %v847_v60 = vmul.f32 %v4145_v61, %v4011_v62 }
 0x314   : > { %982 = vmatmul.bf16.vlgmr.msrb.gmra.mxu0 %v890_v20  ;;  %1017 = vmatmul.bf16.vlgmr.msrb.gmra.mxu1 %v897_v22  ;;  %v4192_v40 = vpack.c.bf16 %v867_v24, %v866_v31  ;;  %v869_v30 = vadd.f32 %v4149_v1, %v834_v27  ;;  %v848_v41 = vmul.f32 %v4145_v61, %v4015_v0 }
 0x315   : > { %1139 = vmatmul.bf16.vlgmr.msrb.gmra.mxu2 %v890_v20  ;;  %1174 = vmatmul.bf16.vlgmr.msrb.gmra.mxu3 %v897_v22  ;;  %v835_v43 = vmul.f32 %v4145_v61, %v3957_v36  ;;  %v901_v33 = vpack.c.bf16 %v881_v34, %v880_v32  ;;  %v882_v45 = vadd.f32 %v4149_v1, %v847_v60  ;;  %v4261_v60 = vld [vmem:[%s4715_s16] ss:$0 sm:$0xff] }
 0x316   : > { %v836_v47 = vmul.f32 %v4145_v61, %v3964_v39  ;;  %v849_v49 = vmul.f32 %v4145_v61, %v4019_v2  ;;  %v895_v62 = vpack.c.bf16 %v869_v30, %v868_v35  ;;  %v883_v51 = vadd.f32 %v4149_v1, %v848_v41 }
 0x317   : > { %v870_v53 = vadd.f32 %v4149_v1, %v835_v43  ;;  %v850_v0 = vmul.f32 %v4145_v61, %v4023_v6  ;;  %v851_v57 = vmul.f32 %v4145_v61, %v4027_v10  ;;  %v852_v39 = vmul.f32 %v4145_v61, %v4031_v13 }
 0x318   : > { %v871_v55 = vadd.f32 %v4149_v1, %v836_v47  ;;  %v884_v36 = vadd.f32 %v4149_v1, %v849_v49  ;;  %v902_v59 = vpack.c.bf16 %v883_v51, %v882_v45  ;;  %v853_v63 = vmul.f32 %v4145_v61, %v4035_v16 }
 0x319   : > { %v885_v2 = vadd.f32 %v4149_v1, %v850_v0  ;;  %v854_v38 = vmul.f32 %v4145_v61, %v4039_v19  ;;  %v886_v3 = vadd.f32 %v4149_v1, %v851_v57  ;;  %v887_v8 = vadd.f32 %v4149_v1, %v852_v39 }
 0x31a   : > { %v896_v6 = vpack.c.bf16 %v871_v55, %v870_v53  ;;  %v888_v10 = vadd.f32 %v4149_v1, %v853_v63  ;;  %v891_v14 = vpack.c.bf16 %v861_v29, %v860_v25  ;;  %v898_v17 = vpack.c.bf16 %v875_v58, %v874_v9 }
 0x31b   : > { %v903_v11 = vpack.c.bf16 %v885_v2, %v884_v36  ;;  %v889_v37 = vadd.f32 %v4149_v1, %v854_v38  ;;  %v904_v13 = vpack.c.bf16 %v887_v8, %v886_v3  ;;  %v827_v16 = vmul.f32 %v4145_v61, %v3901_v12 }
 0x31c   : > { %v828_v19 = vmul.f32 %v4145_v61, %v3908_v15  ;;  %v841_v20 = vmul.f32 %v4145_v61, %v3987_v50  ;;  %v842_v22 = vmul.f32 %v4145_v61, %v3991_v52  ;;  %v829_v12 = vmul.f32 %v4145_v61, %v3915_v18 }
 0x31d   : > { %v905_v4 = vpack.c.bf16 %v889_v37, %v888_v10  ;;  %v862_v5 = vadd.f32 %v4149_v1, %v827_v16  ;;  %v830_v15 = vmul.f32 %v4145_v61, %v3922_v21  ;;  %v843_v50 = vmul.f32 %v4145_v61, %v3995_v54  ;;  %v4252_v54 = vld [vmem:[%s4714_s15] ss:$0 sm:$0xff] }
 0x31e   : > { %v863_v42 = vadd.f32 %v4149_v1, %v828_v19  ;;  %v876_v44 = vadd.f32 %v4149_v1, %v841_v20  ;;  %v877_v23 = vadd.f32 %v4149_v1, %v842_v22  ;;  %v844_v52 = vmul.f32 %v4145_v61, %v3999_v56 }
 0x31f   : > { %v864_v28 = vadd.f32 %v4149_v1, %v829_v12  ;;  %v865_v7 = vadd.f32 %v4149_v1, %v830_v15  ;;  %v878_v29 = vadd.f32 %v4149_v1, %v843_v50 }
 0x320   : > { %v892_v25 = vpack.c.bf16 %v863_v42, %v862_v5  ;;  %v899_v26 = vpack.c.bf16 %v877_v23, %v876_v44  ;;  %v879_v9 = vadd.f32 %v4149_v1, %v844_v52 }
 0x321   : > { %v893_v46 = vpack.c.bf16 %v865_v7, %v864_v28 }
 0x322   : > { %v900_v48 = vpack.c.bf16 %v879_v9, %v878_v29 }
 0x324   : > { %987 = vmatmul.bf16.gmra.mxu0 %v891_v14  ;;  %1022 = vmatmul.bf16.gmra.mxu1 %v898_v17 }
 0x325   : > { %1144 = vmatmul.bf16.gmra.mxu2 %v891_v14  ;;  %1179 = vmatmul.bf16.gmra.mxu3 %v898_v17 }
 0x334   : > { %992 = vmatmul.bf16.gmra.mxu0 %v892_v25  ;;  %1027 = vmatmul.bf16.gmra.mxu1 %v899_v26 }
 0x335   : > { %1149 = vmatmul.bf16.gmra.mxu2 %v892_v25  ;;  %1184 = vmatmul.bf16.gmra.mxu3 %v899_v26 }
 0x344   : > { %997 = vmatmul.bf16.gmra.mxu0 %v893_v46  ;;  %1032 = vmatmul.bf16.gmra.mxu1 %v900_v48 }
 0x345   : > { %1154 = vmatmul.bf16.gmra.mxu2 %v893_v46  ;;  %1189 = vmatmul.bf16.gmra.mxu3 %v900_v48 }
 0x354   : > { %1002 = vmatmul.bf16.gmra.mxu0 %v4192_v40  ;;  %1037 = vmatmul.bf16.gmra.mxu1 %v901_v33 }
 0x355   : > { %1159 = vmatmul.bf16.gmra.mxu2 %v4192_v40  ;;  %1194 = vmatmul.bf16.gmra.mxu3 %v901_v33 }
 0x364   : > { %1007 = vmatmul.bf16.gmra.mxu0 %v895_v62  ;;  %1042 = vmatmul.bf16.gmra.mxu1 %v902_v59 }
 0x365   : > { %1164 = vmatmul.bf16.gmra.mxu2 %v895_v62  ;;  %1199 = vmatmul.bf16.gmra.mxu3 %v902_v59 }
 0x374   : > { %1012 = vmatmul.bf16.gmra.mxu0 %v896_v6  ;;  %1047 = vmatmul.bf16.gmra.mxu1 %v903_v11 }
 0x375   : > { %1169 = vmatmul.bf16.gmra.mxu2 %v896_v6  ;;  %1204 = vmatmul.bf16.gmra.mxu3 %v903_v11 }
 0x384   : > { %1052 = vmatmul.bf16.gmra.mxu1 %v904_v13 }
 0x385   : > { %1209 = vmatmul.bf16.gmra.mxu3 %v904_v13 }
 0x391   : > { %v983_v18 = vpop.f32.mrf.mxu0  ;;  %v1018_v21 = vpop.f32.mrf.mxu1 }
 0x392   : > { %v984_v24 = vadd.f32 %v4252_v54, %v983_v18  ;;  %v1019_v32 = vadd.f32 %v4252_v54, %v1018_v21 }
 0x394   : > { %1057 = vmatmul.bf16.gmra.mxu1 %v905_v4 }
 0x395   : > { %1214 = vmatmul.bf16.gmra.mxu3 %v905_v4 }
 0x398   : > { %v1140_v56 = vpop.f32.mrf.mxu2  ;;  %v1175_v61 = vpop.f32.mrf.mxu3 }
 0x399   : > { %v985_v1 = vpop.f32.mrf.mxu0  ;;  %v1020_v31 = vpop.f32.mrf.mxu1  ;;  %v1141_v41 = vadd.f32 %v4261_v60, %v1140_v56  ;;  %v1176_v43 = vadd.f32 %v4261_v60, %v1175_v61 }
 0x39a   : > { %v986_v27 = vadd.f32 %v4252_v54, %v985_v1  ;;  %v1021_v58 = vadd.f32 %v4252_v54, %v1020_v31 }
 0x39c   : > { %v2890_v34 = vpack.c.bf16 %v986_v27, %v984_v24  ;;  %v2925_v35 = vpack.c.bf16 %v1021_v58, %v1019_v32 }
 0x39e   : > { %2891 = vst [vmem:[#allocation2 + $0x30] sm:$0xff] %v2890_v34  }
 0x39f   : > { %3053 = vst [vmem:[#allocation2 + $0x48] sm:$0xff] %v2925_v35  }
 0x3a0   : > { %v1142_v40 = vpop.f32.mrf.mxu2  ;;  %v1177_v30 = vpop.f32.mrf.mxu3 }
 0x3a1   : > { %v1143_v33 = vadd.f32 %v4261_v60, %v1142_v40  ;;  %v1178_v45 = vadd.f32 %v4261_v60, %v1177_v30  ;;  %v988_v47 = vpop.f32.mrf.mxu0  ;;  %v1023_v49 = vpop.f32.mrf.mxu1 }
 0x3a2   : > { %v989_v57 = vadd.f32 %v4252_v54, %v988_v47  ;;  %v1024_v39 = vadd.f32 %v4252_v54, %v1023_v49 }
 0x3a3   : > { %v2970_v62 = vpack.c.bf16 %v1143_v33, %v1141_v41  ;;  %v3005_v51 = vpack.c.bf16 %v1178_v45, %v1176_v43 }
 0x3a5   : > { %2971 = vst [vmem:[#allocation3 + $0x28] sm:$0xff] %v2970_v62  }
 0x3a6   : > { %3068 = vst [vmem:[#allocation3 + $0x38] sm:$0xff] %v3005_v51  }
 0x3a8   : > { %v1145_v53 = vpop.f32.mrf.mxu2  ;;  %v1180_v0 = vpop.f32.mrf.mxu3 }
 0x3a9   : > { %v990_v55 = vpop.f32.mrf.mxu0  ;;  %v1025_v36 = vpop.f32.mrf.mxu1  ;;  %v1146_v8 = vadd.f32 %v4261_v60, %v1145_v53  ;;  %v1181_v11 = vadd.f32 %v4261_v60, %v1180_v0 }
 0x3aa   : > { %v991_v59 = vadd.f32 %v4252_v54, %v990_v55  ;;  %v1026_v2 = vadd.f32 %v4252_v54, %v1025_v36 }
 0x3ac   : > { %v2895_v63 = vpack.c.bf16 %v991_v59, %v989_v57  ;;  %v2930_v38 = vpack.c.bf16 %v1026_v2, %v1024_v39 }
 0x3ae   : > { %3047 = vst [vmem:[#allocation2] sm:$0xff] %v2895_v63  }
 0x3af   : > { %3054 = vst [vmem:[#allocation2 + $0x40] sm:$0xff] %v2930_v38  }
 0x3b0   : > { %v1147_v6 = vpop.f32.mrf.mxu2  ;;  %v1182_v3 = vpop.f32.mrf.mxu3 }
 0x3b1   : > { %v1148_v10 = vadd.f32 %v4261_v60, %v1147_v6  ;;  %v1183_v37 = vadd.f32 %v4261_v60, %v1182_v3  ;;  %v993_v13 = vpop.f32.mrf.mxu0  ;;  %v1028_v14 = vpop.f32.mrf.mxu1 }
 0x3b2   : > { %v994_v5 = vadd.f32 %v4252_v54, %v993_v13  ;;  %v1029_v42 = vadd.f32 %v4252_v54, %v1028_v14 }
 0x3b3   : > { %v2975_v17 = vpack.c.bf16 %v1148_v10, %v1146_v8  ;;  %v3010_v4 = vpack.c.bf16 %v1183_v37, %v1181_v11 }
 0x3b5   : > { %3062 = vst [vmem:[#allocation3 + $0x68] sm:$0xff] %v2975_v17  }
 0x3b6   : > { %3069 = vst [vmem:[#allocation3 + $0x20] sm:$0xff] %v3010_v4  }
 0x3b8   : > { %v1150_v16 = vpop.f32.mrf.mxu2  ;;  %v1185_v19 = vpop.f32.mrf.mxu3 }
 0x3b9   : > { %v995_v20 = vpop.f32.mrf.mxu0  ;;  %v1030_v22 = vpop.f32.mrf.mxu1  ;;  %v1151_v50 = vadd.f32 %v4261_v60, %v1150_v16  ;;  %v1186_v52 = vadd.f32 %v4261_v60, %v1185_v19 }
 0x3ba   : > { %v996_v44 = vadd.f32 %v4252_v54, %v995_v20  ;;  %v1031_v23 = vadd.f32 %v4252_v54, %v1030_v22 }
 0x3bc   : > { %v2900_v25 = vpack.c.bf16 %v996_v44, %v994_v5  ;;  %v2935_v26 = vpack.c.bf16 %v1031_v23, %v1029_v42 }
 0x3be   : > { %3048 = vst [vmem:[#allocation2 + $0x58] sm:$0xff] %v2900_v25  }
 0x3bf   : > { %3055 = vst [vmem:[#allocation2 + $0x20] sm:$0xff] %v2935_v26  }
 0x3c0   : > { %v1152_v12 = vpop.f32.mrf.mxu2  ;;  %v1187_v15 = vpop.f32.mrf.mxu3 }
 0x3c1   : > { %v1153_v28 = vadd.f32 %v4261_v60, %v1152_v12  ;;  %v1188_v7 = vadd.f32 %v4261_v60, %v1187_v15  ;;  %v998_v29 = vpop.f32.mrf.mxu0  ;;  %v1033_v9 = vpop.f32.mrf.mxu1 }
 0x3c2   : > { %v999_v1 = vadd.f32 %v4252_v54, %v998_v29  ;;  %v1034_v31 = vadd.f32 %v4252_v54, %v1033_v9 }
 0x3c3   : > { %v2980_v46 = vpack.c.bf16 %v1153_v28, %v1151_v50  ;;  %v3015_v48 = vpack.c.bf16 %v1188_v7, %v1186_v52 }
 0x3c5   : > { %3063 = vst [vmem:[#allocation3 + $0x10] sm:$0xff] %v2980_v46  }
 0x3c6   : > { %3070 = vst [vmem:[#allocation3 + $0x78] sm:$0xff] %v3015_v48  }
 0x3c8   : > { %v1155_v18 = vpop.f32.mrf.mxu2  ;;  %v1190_v21 = vpop.f32.mrf.mxu3 }
 0x3c9   : > { %v1000_v56 = vpop.f32.mrf.mxu0  ;;  %v1035_v61 = vpop.f32.mrf.mxu1  ;;  %v1156_v40 = vadd.f32 %v4261_v60, %v1155_v18  ;;  %v1191_v30 = vadd.f32 %v4261_v60, %v1190_v21 }
 0x3ca   : > { %v1001_v24 = vadd.f32 %v4252_v54, %v1000_v56  ;;  %v1036_v32 = vadd.f32 %v4252_v54, %v1035_v61 }
 0x3cc   : > { %v2905_v27 = vpack.c.bf16 %v1001_v24, %v999_v1  ;;  %v2940_v58 = vpack.c.bf16 %v1036_v32, %v1034_v31 }
 0x3ce   : > { %3049 = vst [vmem:[#allocation2 + $0x18] sm:$0xff] %v2905_v27  }
 0x3cf   : > { %3056 = vst [vmem:[#allocation2 + $0x10] sm:$0xff] %v2940_v58  }
 0x3d0   : > { %v1157_v34 = vpop.f32.mrf.mxu2  ;;  %v1192_v35 = vpop.f32.mrf.mxu3 }
 0x3d1   : > { %v1158_v41 = vadd.f32 %v4261_v60, %v1157_v34  ;;  %v1193_v43 = vadd.f32 %v4261_v60, %v1192_v35  ;;  %v1003_v33 = vpop.f32.mrf.mxu0  ;;  %v1038_v45 = vpop.f32.mrf.mxu1 }
 0x3d2   : > { %v1004_v55 = vadd.f32 %v4252_v54, %v1003_v33  ;;  %v1039_v36 = vadd.f32 %v4252_v54, %v1038_v45 }
 0x3d3   : > { %v2985_v47 = vpack.c.bf16 %v1158_v41, %v1156_v40  ;;  %v3020_v49 = vpack.c.bf16 %v1193_v43, %v1191_v30 }
 0x3d5   : > { %3064 = vst [vmem:[#allocation3 + $0x40] sm:$0xff] %v2985_v47  }
 0x3d6   : > { %3071 = vst [vmem:[#allocation3 + $0x18] sm:$0xff] %v3020_v49  }
 0x3d8   : > { %v1160_v62 = vpop.f32.mrf.mxu2  ;;  %v1195_v51 = vpop.f32.mrf.mxu3 }
 0x3d9   : > { %v1005_v53 = vpop.f32.mrf.mxu0  ;;  %v1040_v0 = vpop.f32.mrf.mxu1  ;;  %v1161_v6 = vadd.f32 %v4261_v60, %v1160_v62  ;;  %v1196_v3 = vadd.f32 %v4261_v60, %v1195_v51 }
 0x3da   : > { %v1006_v57 = vadd.f32 %v4252_v54, %v1005_v53  ;;  %v1041_v39 = vadd.f32 %v4252_v54, %v1040_v0 }
 0x3dc   : > { %v2910_v59 = vpack.c.bf16 %v1006_v57, %v1004_v55  ;;  %v2945_v2 = vpack.c.bf16 %v1041_v39, %v1039_v36 }
 0x3de   : > { %3050 = vst [vmem:[#allocation2 + $0x50] sm:$0xff] %v2910_v59  }
 0x3df   : > { %3057 = vst [vmem:[#allocation2 + $0x38] sm:$0xff] %v2945_v2  }
 0x3e0   : > { %v1162_v63 = vpop.f32.mrf.mxu2  ;;  %v1197_v38 = vpop.f32.mrf.mxu3 }
 0x3e1   : > { %v1163_v8 = vadd.f32 %v4261_v60, %v1162_v63  ;;  %v1198_v11 = vadd.f32 %v4261_v60, %v1197_v38  ;;  %v1008_v10 = vpop.f32.mrf.mxu0  ;;  %v1043_v37 = vpop.f32.mrf.mxu1 }
 0x3e2   : > { %v1009_v20 = vadd.f32 %v4252_v54, %v1008_v10  ;;  %v1044_v22 = vadd.f32 %v4252_v54, %v1043_v37 }
 0x3e3   : > { %v2990_v13 = vpack.c.bf16 %v1163_v8, %v1161_v6  ;;  %v3025_v14 = vpack.c.bf16 %v1198_v11, %v1196_v3 }
 0x3e5   : > { %3065 = vst [vmem:[#allocation3 + $0x48] sm:$0xff] %v2990_v13  }
 0x3e6   : > { %3072 = vst [vmem:[#allocation3 + $0x58] sm:$0xff] %v3025_v14  }
 0x3e8   : > { %v1165_v17 = vpop.f32.mrf.mxu2  ;;  %v1200_v4 = vpop.f32.mrf.mxu3 }
 0x3e9   : > { %v1010_v16 = vpop.f32.mrf.mxu0  ;;  %v1045_v19 = vpop.f32.mrf.mxu1  ;;  %v1166_v12 = vadd.f32 %v4261_v60, %v1165_v17  ;;  %v1201_v15 = vadd.f32 %v4261_v60, %v1200_v4 }
 0x3ea   : > { %v1011_v5 = vadd.f32 %v4252_v54, %v1010_v16  ;;  %v1046_v42 = vadd.f32 %v4252_v54, %v1045_v19 }
 0x3ec   : > { %v2915_v44 = vpack.c.bf16 %v1011_v5, %v1009_v20  ;;  %v2950_v23 = vpack.c.bf16 %v1046_v42, %v1044_v22 }
 0x3ee   : > { %3051 = vst [vmem:[#allocation2 + $0x68] sm:$0xff] %v2915_v44  }
 0x3ef   : > { %3058 = vst [vmem:[#allocation2 + $0x60] sm:$0xff] %v2950_v23  }
 0x3f0   : > { %v1167_v25 = vpop.f32.mrf.mxu2  ;;  %v1202_v26 = vpop.f32.mrf.mxu3 }
 0x3f1   : > { %v1168_v50 = vadd.f32 %v4261_v60, %v1167_v25  ;;  %v1203_v52 = vadd.f32 %v4261_v60, %v1202_v26  ;;  %v1013_v28 = vpop.f32.mrf.mxu0  ;;  %v1048_v7 = vpop.f32.mrf.mxu1 }
 0x3f2   : > { %v1014_v56 = vadd.f32 %v4252_v54, %v1013_v28  ;;  %v1049_v61 = vadd.f32 %v4252_v54, %v1048_v7 }
 0x3f3   : > { %v2995_v29 = vpack.c.bf16 %v1168_v50, %v1166_v12  ;;  %v3030_v9 = vpack.c.bf16 %v1203_v52, %v1201_v15 }
 0x3f5   : > { %3066 = vst [vmem:[#allocation3 + $0x30] sm:$0xff] %v2995_v29  }
 0x3f6   : > { %3073 = vst [vmem:[#allocation3] sm:$0xff] %v3030_v9  }
 0x3f8   : > { %v1170_v46 = vpop.f32.mrf.mxu2  ;;  %v1205_v48 = vpop.f32.mrf.mxu3 }
 0x3f9   : > { %v1015_v18 = vpop.f32.mrf.mxu0  ;;  %v1050_v21 = vpop.f32.mrf.mxu1  ;;  %v1171_v34 = vadd.f32 %v4261_v60, %v1170_v46  ;;  %v1206_v35 = vadd.f32 %v4261_v60, %v1205_v48 }
 0x3fa   : > { %v1016_v1 = vadd.f32 %v4252_v54, %v1015_v18  ;;  %v1051_v31 = vadd.f32 %v4252_v54, %v1050_v21 }
 0x3fc   : > { %v2920_v24 = vpack.c.bf16 %v1016_v1, %v1014_v56  ;;  %v2955_v32 = vpack.c.bf16 %v1051_v31, %v1049_v61 }
 0x3fe   : > { %3052 = vst [vmem:[#allocation2 + $0x8] sm:$0xff] %v2920_v24  }
 0x3ff   : > { %3059 = vst [vmem:[#allocation2 + $0x70] sm:$0xff] %v2955_v32  }
 0x400   : > { %v1172_v27 = vpop.f32.mrf.mxu2  ;;  %v1207_v58 = vpop.f32.mrf.mxu3 }
 0x401   : > { %v1173_v40 = vadd.f32 %v4261_v60, %v1172_v27  ;;  %v1208_v30 = vadd.f32 %v4261_v60, %v1207_v58  ;;  %v1053_v41 = vpop.f32.mrf.mxu1 }
 0x402   : > { %v1054_v49 = vadd.f32 %v4252_v54, %v1053_v41 }
 0x403   : > { %v3000_v43 = vpack.c.bf16 %v1173_v40, %v1171_v34  ;;  %v3035_v33 = vpack.c.bf16 %v1208_v30, %v1206_v35 }
 0x405   : > { %3067 = vst [vmem:[#allocation3 + $0x70] sm:$0xff] %v3000_v43  }
 0x406   : > { %3074 = vst [vmem:[#allocation3 + $0x8] sm:$0xff] %v3035_v33  }
 0x408   : > { %v1210_v45 = vpop.f32.mrf.mxu3 }
 0x409   : > { %v1055_v47 = vpop.f32.mrf.mxu1  ;;  %v1211_v0 = vadd.f32 %v4261_v60, %v1210_v45 }
 0x40a   : > { %v1056_v62 = vadd.f32 %v4252_v54, %v1055_v47 }
 0x40c   : > { %v2960_v51 = vpack.c.bf16 %v1056_v62, %v1054_v49 }
 0x40e   : > { %3060 = vst [vmem:[#allocation2 + $0x78] sm:$0xff] %v2960_v51  }
 0x410   : > { %v1212_v53 = vpop.f32.mrf.mxu3 }
 0x411   : > { %v1213_v55 = vadd.f32 %v4261_v60, %v1212_v53  ;;  %v1058_v36 = vpop.f32.mrf.mxu1 }
 0x412   : > { %v1059_v2 = vadd.f32 %v4252_v54, %v1058_v36 }
 0x413   : > { %v3040_v57 = vpack.c.bf16 %v1213_v55, %v1211_v0 }
 0x415   : > { %3075 = vst [vmem:[#allocation3 + $0x60] sm:$0xff] %v3040_v57  }
 0x418   : > { %v1215_v39 = vpop.f32.mrf.mxu3 }
 0x419   : > { %v1060_v59 = vpop.f32.mrf.mxu1  ;;  %v1216_v3 = vadd.f32 %v4261_v60, %v1215_v39 }
 0x41a   : > { %v1061_v63 = vadd.f32 %v4252_v54, %v1060_v59 }
 0x41c   : > { %v2965_v38 = vpack.c.bf16 %v1061_v63, %v1059_v2 }
 0x41e   : > { %3061 = vst [vmem:[#allocation2 + $0x28] sm:$0xff] %v2965_v38  }
 0x420   : > { %v1217_v6 = vpop.f32.mrf.mxu3 }
 0x421   : > { %v1218_v8 = vadd.f32 %v4261_v60, %v1217_v6 }
 0x423   : > { %v3045_v11 = vpack.c.bf16 %v1218_v8, %v1216_v3 }
 0x425   : > { %3076 = vst [vmem:[#allocation3 + $0x50] sm:$0xff] %v3045_v11  }
 0x426 PF: > { %s4716_s5 = sld [smem:[#allocation27_spill]]  ;;  %s2623_s8 = sshll.u32 %s3602_s14, 7  ;;  %v4342_v14 = vld [vmem:[#allocation4] ss:$0 sm:$0xff]  ;;  %v4351_v22 = vld [vmem:[#allocation5] ss:$0 sm:$0xff] }
 0x427   : > { %s4340_s12 = scalar_lea.vmem %s3847_s9, %s2623_s8 [#allocation6]  ;;  %v2854_v61 = vld [vmem:[#allocation2 + $0x48] sm:$0xff]  ;;  %v2861_v30 = vld [vmem:[#allocation2 + $0x78] sm:$0xff]  ;;  %v2860_v49 = vld [vmem:[#allocation2 + $0x70] sm:$0xff]  ;;  %s4717_s13 = sld [smem:[#allocation31_spill]] }
 0x428   : > { %v1350_v4 = vld [vmem:[%s4340_s12] sm:$0xff]  ;;  %v1351_v16 = vld [vmem:[%s4340_s12 + $0x8] sm:$0xff]  ;;  %v1352_v26 = vld [vmem:[%s4340_s12 + $0x10] sm:$0xff]  ;;  %1683 = vmatpush.bf16.xpose.msra.mxu1 %v2854_v61  ;;  %s4718_s15 = sld [smem:[#allocation34_spill]]  ;;  %s2817_s16 = sshll.u32 %s3602_s14, 4 }
 0x429   : > { %v1370_v19 = vmul.f32 %v4342_v14, %v1350_v4  ;;  %v1371_v20 = vmul.f32 %v4342_v14, %v1351_v16  ;;  %v1353_v12 = vld [vmem:[%s4340_s12 + $0x18] sm:$0xff]  ;;  %v1372_v15 = vmul.f32 %v4342_v14, %v1352_v26  ;;  %v1354_v29 = vld [vmem:[%s4340_s12 + $0x20] sm:$0xff]  ;;  %v1355_v9 = vld [vmem:[%s4340_s12 + $0x28] sm:$0xff]  ;;  %s4719_s6 = sld [smem:[#allocation20_spill]]  ;;  %s2419_s11 = sshll.u32 %s3864_s10, 4  ;;  %s2420_s11 = int_to_ptr.vmem [resolvable:$true] %s2419_s11 }
 0x42a   : > { %v1373_v50 = vmul.f32 %v4342_v14, %v1353_v12  ;;  %v1374_v46 = vmul.f32 %v4342_v14, %v1354_v29  ;;  %v1375_v48 = vmul.f32 %v4342_v14, %v1355_v9  ;;  %v2862_v1 = vld [vmem:[#allocation2 + $0x28] sm:$0xff]  ;;  %v1356_v31 = vld [vmem:[%s4340_s12 + $0x30] sm:$0xff]  ;;  %v1357_v24 = vld [vmem:[%s4340_s12 + $0x38] sm:$0xff]  ;;  %s4720_s1 = sld [smem:[#allocation35_spill]]  ;;  %s2405_s8 = scalar_lea.sflag [#allocation8], %s520_s2 }
 0x42b   : > { %v1390_v42 = vadd.f32 %v4351_v22, %v1370_v19  ;;  %v1391_v44 = vadd.f32 %v4351_v22, %v1371_v20  ;;  %v1392_v52 = vadd.f32 %v4351_v22, %v1372_v15  ;;  %1732 = vmatpush.bf16.xpose.msra.mxu2 %v2862_v1  ;;  %v1376_v32 = vmul.f32 %v4342_v14, %v1356_v31  ;;  %v2853_v40 = vld [vmem:[#allocation2 + $0x8] sm:$0xff]  ;;  %v1358_v41 = vld [vmem:[%s4340_s12 + $0x40] sm:$0xff]  ;;  %v2851_v0 = vld [vmem:[#allocation2 + $0x50] sm:$0xff] }
 0x42c   : > { %v2846_v10 = vld [vmem:[%s4716_s5 + $0x38] sm:$0xff]  ;;  %v2845_v54 = vld [vmem:[%s4716_s5 + $0x30] sm:$0xff]  ;;  %v2844_v37 = vld [vmem:[%s4716_s5 + $0x28] sm:$0xff]  ;;  %v1393_v28 = vadd.f32 %v4351_v22, %v1373_v50  ;;  %v1394_v18 = vadd.f32 %v4351_v22, %v1374_v46  ;;  %v1395_v21 = vadd.f32 %v4351_v22, %v1375_v48  ;;  %v1377_v27 = vmul.f32 %v4342_v14, %v1357_v24 }
 0x42d   : > { %1482 = vmatpush.bf16.msra.mxu0 %v2846_v10  ;;  %v2843_v60 = vld [vmem:[%s4716_s5 + $0x20] sm:$0xff]  ;;  %v2842_v13 = vld [vmem:[%s4716_s5 + $0x18] sm:$0xff]  ;;  %v2841_v17 = vld [vmem:[%s4716_s5 + $0x10] sm:$0xff]  ;;  %v1406_v25 = vpack.c.bf16 %v1391_v44, %v1390_v42  ;;  %v1396_v58 = vadd.f32 %v4351_v22, %v1376_v32  ;;  %v1378_v33 = vmul.f32 %v4342_v14, %v1358_v41 }
 0x42e   : > { %v2840_v5 = vld [vmem:[%s4716_s5 + $0x8] sm:$0xff]  ;;  %v2839_v23 = vld [vmem:[%s4716_s5] sm:$0xff]  ;;  %v1407_v7 = vpack.c.bf16 %v1393_v28, %v1392_v52  ;;  %v1408_v56 = vpack.c.bf16 %v1395_v21, %v1394_v18  ;;  %v1397_v34 = vadd.f32 %v4351_v22, %v1377_v27  ;;  %v1360_v36 = vld [vmem:[%s4340_s12 + $0x50] sm:$0xff] }
 0x42f   : > { %v1359_v43 = vld [vmem:[%s4340_s12 + $0x48] sm:$0xff]  ;;  %v1398_v62 = vadd.f32 %v4351_v22, %v1378_v33  ;;  %v2859_v55 = vld [vmem:[#allocation2 + $0x60] sm:$0xff]  ;;  %v1361_v57 = vld [vmem:[%s4340_s12 + $0x58] sm:$0xff]  ;;  %v1380_v39 = vmul.f32 %v4342_v14, %v1360_v36  ;;  %s2818_s23 = sshll.u32 %s4719_s6, 5 }
 0x430   : > { %v1409_v35 = vpack.c.bf16 %v1397_v34, %v1396_v58  ;;  %1684 = vmatpush.bf16.xpose.msra.mxu1 %v2853_v40  ;;  %v1379_v45 = vmul.f32 %v4342_v14, %v1359_v43  ;;  %v2852_v47 = vld [vmem:[#allocation2 + $0x68] sm:$0xff]  ;;  %v1381_v59 = vmul.f32 %v4342_v14, %v1361_v57  ;;  %v2850_v2 = vld [vmem:[#allocation2 + $0x18] sm:$0xff]  ;;  %v2857_v11 = vld [vmem:[#allocation2 + $0x10] sm:$0xff]  ;;  %s2416_s9 = sadd.s32 %s2818_s23, %s2817_s16 }
 0x431   : > { %1483 = vmatpush.bf16.msra.mxu0 %v2845_v54  ;;  %v2858_v63 = vld [vmem:[#allocation2 + $0x38] sm:$0xff]  ;;  %v1400_v38 = vadd.f32 %v4351_v22, %v1380_v39  ;;  %v1362_v10 = vld [vmem:[%s4340_s12 + $0x60] sm:$0xff]  ;;  %v1363_v54 = vld [vmem:[%s4340_s12 + $0x68] sm:$0xff]  ;;  %s2819_s21 = sshll.u32 %s2416_s9, 3  ;;  %s3508_s9 = scalar_lea.hbm %s4720_s1, 512 }
 0x432   : > { %v1399_v51 = vadd.f32 %v4351_v22, %v1379_v45  ;;  %v1401_v6 = vadd.f32 %v4351_v22, %v1381_v59  ;;  %v2849_v8 = vld [vmem:[#allocation2 + $0x58] sm:$0xff]  ;;  %v2848_v4 = vld [vmem:[#allocation2] sm:$0xff]  ;;  %v1364_v20 = vld [vmem:[%s4340_s12 + $0x70] sm:$0xff]  ;;  %s2418_s28 = scalar_lea.hbm %s4720_s1, %s2819_s21 }
 0x433   : > { %1733 = vmatpush.bf16.xpose.msra.mxu2 %v2861_v30  ;;  %v2856_v16 = vld [vmem:[#allocation2 + $0x20] sm:$0xff]  ;;  %v2847_v42 = vld [vmem:[#allocation2 + $0x30] sm:$0xff]  ;;  %s2421_s14 = sshll.u32 %s2418_s28, 4  ;;  %s2422_s14 = int_to_ptr.hbm [resolvable:$true] %s2421_s14 }
 0x434   : > { %v1410_v53 = vpack.c.bf16 %v1399_v51, %v1398_v62  ;;  %v1411_v3 = vpack.c.bf16 %v1401_v6, %v1400_v38  ;;  %v2855_v44 = vld [vmem:[#allocation2 + $0x40] sm:$0xff] }
 0x435   : > { %1484 = vmatpush.bf16.msra.mxu0 %v2844_v37  ;;  %v1382_v37 = vmul.f32 %v4342_v14, %v1362_v10  ;;  %v4406_v52 = vld [vmem:[%s4717_s13] ss:$0 sm:$0xff] }
 0x438   : > { %1685 = vmatpush.bf16.xpose.msra.mxu1 %v2852_v47 }
 0x439   : > { %1485 = vmatpush.bf16.msra.mxu0 %v2843_v60  ;;  %v1383_v60 = vmul.f32 %v4342_v14, %v1363_v54 }
 0x43b   : > { %1734 = vmatpush.bf16.xpose.msra.mxu2 %v2860_v49 }
 0x43d   : > { %1486 = vmatpush.bf16.msra.mxu0 %v2842_v13  ;;  %v1402_v13 = vadd.f32 %v4351_v22, %v1382_v37 }
 0x440   : > { %1686 = vmatpush.bf16.xpose.msra.mxu1 %v2851_v0 }
 0x441   : > { %1487 = vmatpush.bf16.msra.mxu0 %v2841_v17  ;;  %v1403_v17 = vadd.f32 %v4351_v22, %v1383_v60 }
 0x443   : > { %1735 = vmatpush.bf16.xpose.msra.mxu2 %v2859_v55  ;;  %v1412_v19 = vpack.c.bf16 %v1403_v17, %v1402_v13 }
 0x445   : > { %1488 = vmatpush.bf16.msra.mxu0 %v2840_v5  ;;  %v1365_v5 = vld [vmem:[%s4340_s12 + $0x78] sm:$0xff] }
 0x448   : > { %1687 = vmatpush.bf16.xpose.msra.mxu1 %v2850_v2 }
 0x449   : > { %1489 = vmatpush.bf16.msra.mxu0 %v2839_v23  ;;  %v1384_v23 = vmul.f32 %v4342_v14, %v1364_v20 }
 0x44b   : > { %1736 = vmatpush.bf16.xpose.msra.mxu2 %v2858_v63  ;;  %v1404_v26 = vadd.f32 %v4351_v22, %v1384_v23 }
 0x44c   : > { %1490 = vmatmul.bf16.vlgmr.msra.gmra.mxu0 %v1406_v25  ;;  %v1385_v25 = vmul.f32 %v4342_v14, %v1365_v5 }
 0x44e   : > { %v1405_v12 = vadd.f32 %v4351_v22, %v1385_v25  ;;  %v2869_v25 = vld [vmem:[#allocation3 + $0x70] sm:$0xff] }
 0x450   : > { %1688 = vmatpush.bf16.xpose.msra.mxu1 %v2849_v8  ;;  %v1413_v15 = vpack.c.bf16 %v1405_v12, %v1404_v26 }
 0x453   : > { %1737 = vmatpush.bf16.xpose.msra.mxu2 %v2857_v11 }
 0x458   : > { %1689 = vmatpush.bf16.xpose.msra.mxu1 %v2848_v4 }
 0x45b   : > { %1738 = vmatpush.bf16.xpose.msra.mxu2 %v2856_v16 }
 0x45c   : > { %1495 = vmatmul.bf16.gmra.mxu0 %v1407_v7 }
 0x460   : > { %1690 = vmatpush.bf16.xpose.msra.mxu1 %v2847_v42  ;;  %v2870_v42 = vld [vmem:[#allocation3 + $0x38] sm:$0xff] }
 0x461   : > { %3093 = vmatpush.bf16.msra.mxu3 %v2870_v42 }
 0x463   : > { %1739 = vmatpush.bf16.xpose.msra.mxu2 %v2855_v44  ;;  %v2878_v44 = vld [vmem:[#allocation3 + $0x50] sm:$0xff] }
 0x464   : > { %2166 = vmatpush.bf16.msrb.mxu0 %v2878_v44 }
 0x465   : > { %3094 = vmatpush.bf16.msra.mxu3 %v2869_v25 }
 0x468   : > { %3101 = vmatpush.bf16.msrb.mxu1 %v2878_v44 }
 0x46b   : > { %2117 = vmatpush.bf16.msrb.mxu2 %v2870_v42 }
 0x46c   : > { %1500 = vmatmul.bf16.gmra.mxu0 %v1408_v56 }
 0x46f   : > { %2118 = vmatpush.bf16.msrb.mxu2 %v2869_v25 }
 0x47c   : > { %1505 = vmatmul.bf16.gmra.mxu0 %v1409_v35 }
 0x48c   : > { %1510 = vmatmul.bf16.gmra.mxu0 %v1410_v53 }
 0x49c   : > { %1515 = vmatmul.bf16.gmra.mxu0 %v1411_v3 }
 0x4ac   : > { %1520 = vmatmul.bf16.gmra.mxu0 %v1412_v19 }
 0x4bc   : > { %1525 = vmatmul.bf16.gmra.mxu0 %v1413_v15 }
 0x4c9   : > { %v1491_v50 = vpop.f32.mrf.mxu0 }
 0x4ca   : > { %v1492_v28 = vadd.f32 %v4406_v52, %v1491_v50  ;;  %v2877_v50 = vld [vmem:[#allocation3 + $0x60] sm:$0xff] }
 0x4cb   : > { %2167 = vmatpush.bf16.msrb.mxu0 %v2877_v50  ;;  %3102 = vmatpush.bf16.msrb.mxu1 %v2877_v50 }
 0x4cc   : > { %v1531_v14 = vmul.f32 0.17677669, %v1492_v28 }
 0x4d1   : > { %v1493_v7 = vpop.f32.mrf.mxu0 }
 0x4d2   : > { %v1494_v29 = vadd.f32 %v4406_v52, %v1493_v7 }
 0x4d4   : > { %v1532_v9 = vmul.f32 0.17677669, %v1494_v29  ;;  %v2868_v29 = vld [vmem:[#allocation3 + $0x30] sm:$0xff] }
 0x4d5   : > { %2119 = vmatpush.bf16.msrb.mxu2 %v2868_v29  ;;  %3095 = vmatpush.bf16.msra.mxu3 %v2868_v29 }
 0x4d6   : > { %v1547_v46 = vpack.c.bf16 %v1532_v9, %v1531_v14 }
 0x4d8   : > { %1691 = vmatmul.bf16.vlgmr.msra.gmra.mxu1 %v1547_v46  ;;  %1740 = vmatmul.bf16.vlgmr.msra.gmra.mxu2 %v1547_v46 }
 0x4d9   : > { %v1496_v48 = vpop.f32.mrf.mxu0 }
 0x4da   : > { %v1497_v22 = vadd.f32 %v4406_v52, %v1496_v48  ;;  %v2876_v48 = vld [vmem:[#allocation3 + $0x8] sm:$0xff] }
 0x4db   : > { %2168 = vmatpush.bf16.msrb.mxu0 %v2876_v48  ;;  %3103 = vmatpush.bf16.msrb.mxu1 %v2876_v48 }
 0x4dc   : > { %v1533_v56 = vmul.f32 0.17677669, %v1497_v22 }
 0x4e1   : > { %v1498_v18 = vpop.f32.mrf.mxu0 }
 0x4e2   : > { %v1499_v21 = vadd.f32 %v4406_v52, %v1498_v18 }
 0x4e4   : > { %v1534_v61 = vmul.f32 0.17677669, %v1499_v21 }
 0x4e6   : > { %v1548_v1 = vpack.c.bf16 %v1534_v61, %v1533_v56  ;;  %v2867_v56 = vld [vmem:[#allocation3 + $0x48] sm:$0xff] }
 0x4e7   : > { %2120 = vmatpush.bf16.msrb.mxu2 %v2867_v56  ;;  %3096 = vmatpush.bf16.msra.mxu3 %v2867_v56 }
 0x4e8   : > { %1696 = vmatmul.bf16.gmra.mxu1 %v1548_v1  ;;  %1745 = vmatmul.bf16.gmra.mxu2 %v1548_v1 }
 0x4e9   : > { %v1501_v31 = vpop.f32.mrf.mxu0 }
 0x4ea   : > { %v1502_v24 = vadd.f32 %v4406_v52, %v1501_v31 }
 0x4ec   : > { %v1535_v58 = vmul.f32 0.17677669, %v1502_v24  ;;  %v2875_v24 = vld [vmem:[#allocation3] sm:$0xff] }
 0x4ed   : > { %2169 = vmatpush.bf16.msrb.mxu0 %v2875_v24  ;;  %3104 = vmatpush.bf16.msrb.mxu1 %v2875_v24 }
 0x4f1   : > { %v1503_v32 = vpop.f32.mrf.mxu0 }
 0x4f2   : > { %v1504_v27 = vadd.f32 %v4406_v52, %v1503_v32 }
 0x4f4   : > { %v1536_v34 = vmul.f32 0.17677669, %v1504_v27 }
 0x4f6   : > { %v1549_v35 = vpack.c.bf16 %v1536_v34, %v1535_v58  ;;  %v2866_v34 = vld [vmem:[#allocation3 + $0x40] sm:$0xff] }
 0x4f7   : > { %2121 = vmatpush.bf16.msrb.mxu2 %v2866_v34  ;;  %3097 = vmatpush.bf16.msra.mxu3 %v2866_v34 }
 0x4f8   : > { %1701 = vmatmul.bf16.gmra.mxu1 %v1549_v35  ;;  %1750 = vmatmul.bf16.gmra.mxu2 %v1549_v35 }
 0x4f9   : > { %v1506_v40 = vpop.f32.mrf.mxu0 }
 0x4fa   : > { %v1507_v30 = vadd.f32 %v4406_v52, %v1506_v40 }
 0x4fc   : > { %v1537_v33 = vmul.f32 0.17677669, %v1507_v30 }
 0x501   : > { %v1508_v41 = vpop.f32.mrf.mxu0 }
 0x502   : > { %v1509_v43 = vadd.f32 %v4406_v52, %v1508_v41  ;;  %v2874_v41 = vld [vmem:[#allocation3 + $0x58] sm:$0xff] }
 0x503   : > { %2170 = vmatpush.bf16.msrb.mxu0 %v2874_v41  ;;  %3105 = vmatpush.bf16.msrb.mxu1 %v2874_v41 }
 0x504   : > { %v1538_v45 = vmul.f32 0.17677669, %v1509_v43 }
 0x506   : > { %v1550_v47 = vpack.c.bf16 %v1538_v45, %v1537_v33 }
 0x508   : > { %1706 = vmatmul.bf16.gmra.mxu1 %v1550_v47  ;;  %1755 = vmatmul.bf16.gmra.mxu2 %v1550_v47  ;;  %v2865_v47 = vld [vmem:[#allocation3 + $0x10] sm:$0xff] }
 0x509   : > { %v1511_v49 = vpop.f32.mrf.mxu0  ;;  %2122 = vmatpush.bf16.msrb.mxu2 %v2865_v47  ;;  %3098 = vmatpush.bf16.msra.mxu3 %v2865_v47 }
 0x50a   : > { %v1512_v62 = vadd.f32 %v4406_v52, %v1511_v49 }
 0x50c   : > { %v1539_v0 = vmul.f32 0.17677669, %v1512_v62 }
 0x511   : > { %v1513_v51 = vpop.f32.mrf.mxu0 }
 0x512   : > { %v1514_v53 = vadd.f32 %v4406_v52, %v1513_v51 }
 0x514   : > { %v1540_v55 = vmul.f32 0.17677669, %v1514_v53  ;;  %v2873_v53 = vld [vmem:[#allocation3 + $0x18] sm:$0xff] }
 0x515   : > { %2171 = vmatpush.bf16.msrb.mxu0 %v2873_v53  ;;  %3106 = vmatpush.bf16.msrb.mxu1 %v2873_v53 }
 0x516   : > { %v1551_v36 = vpack.c.bf16 %v1540_v55, %v1539_v0 }
 0x518   : > { %1711 = vmatmul.bf16.gmra.mxu1 %v1551_v36  ;;  %1760 = vmatmul.bf16.gmra.mxu2 %v1551_v36 }
 0x519   : > { %v1516_v57 = vpop.f32.mrf.mxu0 }
 0x51a   : > { %v1517_v39 = vadd.f32 %v4406_v52, %v1516_v57  ;;  %v2864_v57 = vld [vmem:[#allocation3 + $0x68] sm:$0xff] }
 0x51b   : > { %2123 = vmatpush.bf16.msrb.mxu2 %v2864_v57  ;;  %3099 = vmatpush.bf16.msra.mxu3 %v2864_v57 }
 0x51c   : > { %v1541_v63 = vmul.f32 0.17677669, %v1517_v39 }
 0x521   : > { %v1518_v59 = vpop.f32.mrf.mxu0 }
 0x522   : > { %v1519_v2 = vadd.f32 %v4406_v52, %v1518_v59 }
 0x524   : > { %v1542_v38 = vmul.f32 0.17677669, %v1519_v2 }
 0x526   : > { %v1552_v6 = vpack.c.bf16 %v1542_v38, %v1541_v63  ;;  %v2872_v63 = vld [vmem:[#allocation3 + $0x78] sm:$0xff] }
 0x527   : > { %2172 = vmatpush.bf16.msrb.mxu0 %v2872_v63  ;;  %3107 = vmatpush.bf16.msrb.mxu1 %v2872_v63 }
 0x528   : > { %1716 = vmatmul.bf16.gmra.mxu1 %v1552_v6  ;;  %1765 = vmatmul.bf16.gmra.mxu2 %v1552_v6 }
 0x529   : > { %v1521_v3 = vpop.f32.mrf.mxu0 }
 0x52a   : > { %v1522_v8 = vadd.f32 %v4406_v52, %v1521_v3 }
 0x52c   : > { %v1543_v54 = vmul.f32 0.17677669, %v1522_v8  ;;  %v2863_v8 = vld [vmem:[#allocation3 + $0x28] sm:$0xff] }
 0x52d   : > { %2124 = vmatpush.bf16.msrb.mxu2 %v2863_v8  ;;  %3100 = vmatpush.bf16.msra.mxu3 %v2863_v8 }
 0x531   : > { %v1523_v11 = vpop.f32.mrf.mxu0 }
 0x532   : > { %v1524_v10 = vadd.f32 %v4406_v52, %v1523_v11 }
 0x534   : > { %v1544_v37 = vmul.f32 0.17677669, %v1524_v10 }
 0x536   : > { %v1553_v60 = vpack.c.bf16 %v1544_v37, %v1543_v54  ;;  %v2871_v37 = vld [vmem:[#allocation3 + $0x20] sm:$0xff] }
 0x537   : > { %2173 = vmatpush.bf16.msrb.mxu0 %v2871_v37  ;;  %3108 = vmatpush.bf16.msrb.mxu1 %v2871_v37 }
 0x538   : > { %1721 = vmatmul.bf16.gmra.mxu1 %v1553_v60  ;;  %1770 = vmatmul.bf16.gmra.mxu2 %v1553_v60 }
 0x539   : > { %v1526_v13 = vpop.f32.mrf.mxu0 }
 0x53a   : > { %v1527_v17 = vadd.f32 %v4406_v52, %v1526_v13 }
 0x53c   : > { %v1545_v19 = vmul.f32 0.17677669, %v1527_v17 }
 0x541   : > { %v1528_v4 = vpop.f32.mrf.mxu0 }
 0x542   : > { %v1529_v16 = vadd.f32 %v4406_v52, %v1528_v4 }
 0x544   : > { %v1546_v20 = vmul.f32 0.17677669, %v1529_v16 }
 0x546   : > { %v1554_v5 = vpack.c.bf16 %v1546_v20, %v1545_v19 }
 0x548   : > { %1726 = vmatmul.bf16.gmra.mxu1 %v1554_v5  ;;  %1775 = vmatmul.bf16.gmra.mxu2 %v1554_v5 }
 0x555   : > { %v4424_v23 = vpop.f32.mrf.mxu1 }
 0x55b   : > { %v4426_v26 = vpop.f32.mrf.mxu2 }
 0x55c   : > { %v1781_v12 = vmax.f32 %v4424_v23, %v4426_v26 }
 0x55d   : > { %v4430_v15 = vpop.f32.mrf.mxu1 }
 0x55e   : > { %1782 = vmax.xlane.f32.xlu0 %v1781_v12 }
 0x563   : > { %v4432_v52 = vpop.f32.mrf.mxu2 }
 0x564   : > { %v1784_v28 = vmax.f32 %v4430_v15, %v4432_v52 }
 0x565   : > { %v4436_v7 = vpop.f32.mrf.mxu1 }
 0x566   : > { %1785 = vmax.xlane.f32.xlu0 %v1784_v28 }
 0x56b   : > { %v4438_v14 = vpop.f32.mrf.mxu2 }
 0x56c   : > { %v1787_v9 = vmax.f32 %v4436_v7, %v4438_v14 }
 0x56d   : > { %v4442_v46 = vpop.f32.mrf.mxu1 }
 0x56e   : > { %1788 = vmax.xlane.f32.xlu1 %v1787_v9 }
 0x573   : > { %v4444_v22 = vpop.f32.mrf.mxu2 }
 0x574   : > { %v1790_v18 = vmax.f32 %v4442_v46, %v4444_v22 }
 0x575   : > { %v4448_v21 = vpop.f32.mrf.mxu1 }
 0x576   : > { %1791 = vmax.xlane.f32.xlu1 %v1790_v18 }
 0x57b   : > { %v4450_v61 = vpop.f32.mrf.mxu2 }
 0x57c   : > { %v1793_v1 = vmax.f32 %v4448_v21, %v4450_v61 }
 0x57d   : > { %v4454_v31 = vpop.f32.mrf.mxu1 }
 0x57e   : > { %1794 = vmax.xlane.f32.xlu2 %v1793_v1 }
 0x583   : > { %v4456_v32 = vpop.f32.mrf.mxu2 }
 0x584   : > { %v1796_v27 = vmax.f32 %v4454_v31, %v4456_v32 }
 0x585   : > { %v4460_v58 = vpop.f32.mrf.mxu1 }
 0x586   : > { %1797 = vmax.xlane.f32.xlu2 %v1796_v27 }
 0x58b   : > { %v4462_v35 = vpop.f32.mrf.mxu2 }
 0x58c   : > { %v1799_v40 = vmax.f32 %v4460_v58, %v4462_v35 }
 0x58d   : > { %v4466_v30 = vpop.f32.mrf.mxu1 }
 0x58e   : > { %1800 = vmax.xlane.f32.xlu0 %v1799_v40 }
 0x593   : > { %v4468_v43 = vpop.f32.mrf.mxu2 }
 0x594   : > { %v1802_v33 = vmax.f32 %v4466_v30, %v4468_v43 }
 0x595   : > { %v4472_v45 = vpop.f32.mrf.mxu1 }
 0x596   : > { %1803 = vmax.xlane.f32.xlu1 %v1802_v33 }
 0x59b   : > { %v4474_v49 = vpop.f32.mrf.mxu2 }
 0x59c   : > { %v1805_v62 = vmax.f32 %v4472_v45, %v4474_v49 }
 0x59d   : > { %v4478_v51 = vpop.f32.mrf.mxu1 }
 0x59e   : > { %1806 = vmax.xlane.f32.xlu2 %v1805_v62 }
 0x5a3   : > { %v4480_v0 = vpop.f32.mrf.mxu2 }
 0x5a4   : > { %v1808_v55 = vmax.f32 %v4478_v51, %v4480_v0 }
 0x5a5   : > { %v4484_v36 = vpop.f32.mrf.mxu1 }
 0x5a6   : > { %1809 = vmax.xlane.f32.xlu0 %v1808_v55 }
 0x5ab   : > { %v4486_v39 = vpop.f32.mrf.mxu2 }
 0x5ac   : > { %v1811_v59 = vmax.f32 %v4484_v36, %v4486_v39 }
 0x5ad   : > { %v4490_v2 = vpop.f32.mrf.mxu1 }
 0x5ae   : > { %1812 = vmax.xlane.f32.xlu1 %v1811_v59 }
 0x5b3   : > { %v4492_v38 = vpop.f32.mrf.mxu2 }
 0x5b4   : > { %v1814_v6 = vmax.f32 %v4490_v2, %v4492_v38 }
 0x5b5   : > { %v4496_v3 = vpop.f32.mrf.mxu1 }
 0x5b6   : > { %1815 = vmax.xlane.f32.xlu2 %v1814_v6 }
 0x5bb   : > { %v4498_v11 = vpop.f32.mrf.mxu2 }
 0x5bc   : > { %v1817_v10 = vmax.f32 %v4496_v3, %v4498_v11 }
 0x5bd   : > { %v4502_v54 = vpop.f32.mrf.mxu1 }
 0x5be   : > { %1818 = vmax.xlane.f32.xlu0 %v1817_v10 }
 0x5c3   : > { %v4504_v60 = vpop.f32.mrf.mxu2 }
 0x5c4   : > { %v1820_v13 = vmax.f32 %v4502_v54, %v4504_v60 }
 0x5c5   : > { %v4508_v17 = vpop.f32.mrf.mxu1 }
 0x5c6   : > { %1821 = vmax.xlane.f32.xlu1 %v1820_v13 }
 0x5cb   : > { %v4510_v4 = vpop.f32.mrf.mxu2 }
 0x5cc   : > { %v1823_v16 = vmax.f32 %v4508_v17, %v4510_v4 }
 0x5cd   : > { %v4516_v42 = vpop.f32.mrf.mxu1 }
 0x5ce   : > { %1824 = vmax.xlane.f32.xlu2 %v1823_v16 }
 0x5d1   : > { %v1783_v19 = vpop.xlane.xlu0 %1782 }
 0x5d2   : > { %v1829_v20 = vsub.f32 %v4424_v23, %v1783_v19  ;;  %v1830_v5 = vsub.f32 %v4426_v26, %v1783_v19 }
 0x5d3   : > { %v4518_v44 = vpop.f32.mrf.mxu2 }
 0x5d4   : > { %v1861_v25 = vmul.f32 1.442695, %v1829_v20  ;;  %v1863_v12 = vmul.f32 1.442695, %v1830_v5  ;;  %v1826_v50 = vmax.f32 %v4516_v42, %v4518_v44 }
 0x5d6   : > { %3256 = vpow2.f32 %v1861_v25  ;;  %1827 = vmax.xlane.f32.xlu0 %v1826_v50 }
 0x5d7   : > { %3258 = vpow2.f32 %v1863_v12 }
 0x5d9   : > { %v1786_v28 = vpop.xlane.xlu0 %1785 }
 0x5da   : > { %v1831_v29 = vsub.f32 %v4430_v15, %v1786_v28  ;;  %v1832_v9 = vsub.f32 %v4432_v52, %v1786_v28 }
 0x5dc   : > { %v3257_v23 = vpop.eup %3256  ;;  %v1865_v48 = vmul.f32 1.442695, %v1831_v29  ;;  %v1867_v26 = vmul.f32 1.442695, %v1832_v9 }
 0x5dd   : > { %v3259_v18 = vpop.eup %3258 }
 0x5de   : > { %3260 = vpow2.f32 %v1865_v48  ;;  %v1925_v56 = vadd.f32 %v3259_v18, %v3257_v23 }
 0x5df   : > { %3262 = vpow2.f32 %v1867_v26 }
 0x5e0   : > { %1926 = vadd.xlane.f32.xlu1 %v1925_v56 }
 0x5e1   : > { %v1789_v1 = vpop.xlane.xlu1 %1788 }
 0x5e2   : > { %v1833_v24 = vsub.f32 %v4436_v7, %v1789_v1  ;;  %v1834_v27 = vsub.f32 %v4438_v14, %v1789_v1 }
 0x5e4   : > { %v3261_v34 = vpop.eup %3260  ;;  %v1869_v40 = vmul.f32 1.442695, %v1833_v24  ;;  %v1871_v41 = vmul.f32 1.442695, %v1834_v27  ;;  %v2886_v27 = vld [vmem:[#allocation12 + $0x38] sm:$0xff] }
 0x5e5   : > { %v3263_v33 = vpop.eup %3262  ;;  %v1973_v15 = vpack.c.bf16 %v3261_v34, %v3257_v23  ;;  %2323 = vmatpush.bf16.msrb.mxu3 %v2886_v27 }
 0x5e6   : > { %3264 = vpow2.f32 %v1869_v40  ;;  %v1974_v52 = vpack.c.bf16 %v3263_v33, %v3259_v18  ;;  %v1928_v47 = vadd.f32 %v3263_v33, %v3261_v34 }
 0x5e7   : > { %3266 = vpow2.f32 %v1871_v41  ;;  %2125 = vmatmul.bf16.vlgmr.msrb.gmra.mxu2 %v1973_v15 }
 0x5e8   : > { %2174 = vmatmul.bf16.vlgmr.msrb.gmra.mxu0 %v1974_v52  ;;  %1929 = vadd.xlane.f32.xlu2 %v1928_v47 }
 0x5e9   : > { %v1792_v62 = vpop.xlane.xlu1 %1791 }
 0x5ea   : > { %v1835_v53 = vsub.f32 %v4442_v46, %v1792_v62  ;;  %v1836_v55 = vsub.f32 %v4444_v22, %v1792_v62 }
 0x5ec   : > { %v3265_v7 = vpop.eup %3264  ;;  %v1873_v57 = vmul.f32 1.442695, %v1835_v53  ;;  %v1875_v14 = vmul.f32 1.442695, %v1836_v55 }
 0x5ed   : > { %v3267_v59 = vpop.eup %3266 }
 0x5ee   : > { %3268 = vpow2.f32 %v1873_v57  ;;  %v1931_v63 = vadd.f32 %v3267_v59, %v3265_v7 }
 0x5ef   : > { %3270 = vpow2.f32 %v1875_v14 }
 0x5f0   : > { %1932 = vadd.xlane.f32.xlu0 %v1931_v63  ;;  %v2885_v63 = vld [vmem:[#allocation12 + $0x30] sm:$0xff] }
 0x5f1   : > { %v1795_v6 = vpop.xlane.xlu2 %1794  ;;  %2324 = vmatpush.bf16.msrb.mxu3 %v2885_v63 }
 0x5f2   : > { %v1837_v8 = vsub.f32 %v4448_v21, %v1795_v6  ;;  %v1838_v10 = vsub.f32 %v4450_v61, %v1795_v6 }
 0x5f4   : > { %v3269_v37 = vpop.eup %3268  ;;  %v1877_v13 = vmul.f32 1.442695, %v1837_v8  ;;  %v1879_v16 = vmul.f32 1.442695, %v1838_v10 }
 0x5f5   : > { %v3271_v19 = vpop.eup %3270  ;;  %v1975_v46 = vpack.c.bf16 %v3269_v37, %v3265_v7 }
 0x5f6   : > { %3272 = vpow2.f32 %v1877_v13  ;;  %v1976_v22 = vpack.c.bf16 %v3271_v19, %v3267_v59  ;;  %v1934_v20 = vadd.f32 %v3271_v19, %v3269_v37  ;;  %v2884_v19 = vld [vmem:[#allocation12 + $0x28] sm:$0xff] }
 0x5f7   : > { %3274 = vpow2.f32 %v1879_v16  ;;  %2130 = vmatmul.bf16.gmra.mxu2 %v1975_v46  ;;  %2325 = vmatpush.bf16.msrb.mxu3 %v2884_v19 }
 0x5f8   : > { %2179 = vmatmul.bf16.gmra.mxu0 %v1976_v22  ;;  %1935 = vadd.xlane.f32.xlu1 %v1934_v20 }
 0x5f9   : > { %v1798_v5 = vpop.xlane.xlu2 %1797 }
 0x5fa   : > { %v1839_v25 = vsub.f32 %v4454_v31, %v1798_v5  ;;  %v1840_v12 = vsub.f32 %v4456_v32, %v1798_v5 }
 0x5fc   : > { %v3273_v21 = vpop.eup %3272  ;;  %v1881_v50 = vmul.f32 1.442695, %v1839_v25  ;;  %v1883_v61 = vmul.f32 1.442695, %v1840_v12 }
 0x5fd   : > { %v3275_v28 = vpop.eup %3274 }
 0x5fe   : > { %3276 = vpow2.f32 %v1881_v50  ;;  %v1937_v29 = vadd.f32 %v3275_v28, %v3273_v21 }
 0x5ff   : > { %3278 = vpow2.f32 %v1883_v61  ;;  %v2883_v61 = vld [vmem:[#allocation12 + $0x20] sm:$0xff] }
 0x600   : > { %1938 = vadd.xlane.f32.xlu2 %v1937_v29  ;;  %2326 = vmatpush.bf16.msrb.mxu3 %v2883_v61 }
 0x601   : > { %v1801_v9 = vpop.xlane.xlu0 %1800 }
 0x602   : > { %v1841_v23 = vsub.f32 %v4460_v58, %v1801_v9  ;;  %v1842_v48 = vsub.f32 %v4462_v35, %v1801_v9 }
 0x604   : > { %v3277_v26 = vpop.eup %3276  ;;  %v1885_v18 = vmul.f32 1.442695, %v1841_v23  ;;  %v1887_v56 = vmul.f32 1.442695, %v1842_v48 }
 0x605   : > { %v3279_v1 = vpop.eup %3278  ;;  %v1977_v31 = vpack.c.bf16 %v3277_v26, %v3273_v21 }
 0x606   : > { %3280 = vpow2.f32 %v1885_v18  ;;  %v1978_v32 = vpack.c.bf16 %v3279_v1, %v3275_v28  ;;  %v1940_v24 = vadd.f32 %v3279_v1, %v3277_v26  ;;  %v2882_v18 = vld [vmem:[#allocation12 + $0x18] sm:$0xff] }
 0x607   : > { %3282 = vpow2.f32 %v1887_v56  ;;  %2135 = vmatmul.bf16.gmra.mxu2 %v1977_v31  ;;  %2327 = vmatpush.bf16.msrb.mxu3 %v2882_v18 }
 0x608   : > { %2184 = vmatmul.bf16.gmra.mxu0 %v1978_v32  ;;  %1941 = vadd.xlane.f32.xlu0 %v1940_v24 }
 0x609   : > { %v1804_v34 = vpop.xlane.xlu1 %1803 }
 0x60a   : > { %v1843_v40 = vsub.f32 %v4466_v30, %v1804_v34  ;;  %v1844_v58 = vsub.f32 %v4468_v43, %v1804_v34 }
 0x60c   : > { %v3281_v35 = vpop.eup %3280  ;;  %v1889_v41 = vmul.f32 1.442695, %v1843_v40  ;;  %v1891_v33 = vmul.f32 1.442695, %v1844_v58 }
 0x60d   : > { %v3283_v15 = vpop.eup %3282 }
 0x60e   : > { %3284 = vpow2.f32 %v1889_v41  ;;  %v1943_v52 = vadd.f32 %v3283_v15, %v3281_v35 }
 0x60f   : > { %3286 = vpow2.f32 %v1891_v33 }
 0x610   : > { %1944 = vadd.xlane.f32.xlu1 %v1943_v52 }
 0x611   : > { %v1807_v47 = vpop.xlane.xlu2 %1806 }
 0x612   : > { %v1845_v62 = vsub.f32 %v4472_v45, %v1807_v47  ;;  %v1846_v53 = vsub.f32 %v4474_v49, %v1807_v47 }
 0x614   : > { %v3285_v55 = vpop.eup %3284  ;;  %v1893_v7 = vmul.f32 1.442695, %v1845_v62  ;;  %v1895_v57 = vmul.f32 1.442695, %v1846_v53 }
 0x615   : > { %v3287_v30 = vpop.eup %3286  ;;  %v1979_v14 = vpack.c.bf16 %v3285_v55, %v3281_v35 }
 0x616   : > { %3288 = vpow2.f32 %v1893_v7  ;;  %v1980_v43 = vpack.c.bf16 %v3287_v30, %v3283_v15  ;;  %v1946_v59 = vadd.f32 %v3287_v30, %v3285_v55  ;;  %v2881_v15 = vld [vmem:[#allocation12 + $0x10] sm:$0xff] }
 0x617   : > { %3290 = vpow2.f32 %v1895_v57  ;;  %2140 = vmatmul.bf16.vlgmr.msra.gmra.mxu3 %v1979_v14  ;;  %v2880_v14 = vld [vmem:[#allocation12 + $0x8] sm:$0xff] }
 0x618   : > { %2189 = vmatmul.bf16.gmra.mxu0 %v1980_v43  ;;  %1947 = vadd.xlane.f32.xlu2 %v1946_v59 }
 0x619   : > { %v1810_v6 = vpop.xlane.xlu0 %1809  ;;  %2328 = vmatpush.bf16.msrb.mxu3 %v2881_v15 }
 0x61a   : > { %v1847_v8 = vsub.f32 %v4478_v51, %v1810_v6  ;;  %v1848_v45 = vsub.f32 %v4480_v0, %v1810_v6 }
 0x61c   : > { %v3289_v49 = vpop.eup %3288  ;;  %v1897_v10 = vmul.f32 1.442695, %v1847_v8  ;;  %v1899_v37 = vmul.f32 1.442695, %v1848_v45 }
 0x61d   : > { %v3291_v13 = vpop.eup %3290  ;;  %2329 = vmatpush.bf16.msrb.mxu3 %v2880_v14 }
 0x61e   : > { %3292 = vpow2.f32 %v1897_v10  ;;  %v1949_v16 = vadd.f32 %v3291_v13, %v3289_v49  ;;  %v2879_v10 = vld [vmem:[#allocation12] sm:$0xff] }
 0x61f   : > { %3294 = vpow2.f32 %v1899_v37 }
 0x620   : > { %1950 = vadd.xlane.f32.xlu0 %v1949_v16 }
 0x621   : > { %v1813_v46 = vpop.xlane.xlu1 %1812  ;;  %2330 = vmatpush.bf16.msrb.mxu3 %v2879_v10 }
 0x622   : > { %v1849_v22 = vsub.f32 %v4484_v36, %v1813_v46  ;;  %v1850_v20 = vsub.f32 %v4486_v39, %v1813_v46 }
 0x624   : > { %v3293_v5 = vpop.eup %3292  ;;  %v1901_v25 = vmul.f32 1.442695, %v1849_v22  ;;  %v1903_v51 = vmul.f32 1.442695, %v1850_v20 }
 0x625   : > { %v3295_v12 = vpop.eup %3294  ;;  %v1981_v0 = vpack.c.bf16 %v3293_v5, %v3289_v49 }
 0x626   : > { %3296 = vpow2.f32 %v1901_v25  ;;  %v1982_v21 = vpack.c.bf16 %v3295_v12, %v3291_v13  ;;  %v1952_v50 = vadd.f32 %v3295_v12, %v3293_v5 }
 0x627   : > { %3298 = vpow2.f32 %v1903_v51  ;;  %2145 = vmatmul.bf16.gmra.mxu3 %v1981_v0 }
 0x628   : > { %2194 = vmatmul.bf16.gmra.mxu0 %v1982_v21  ;;  %1953 = vadd.xlane.f32.xlu1 %v1952_v50 }
 0x629   : > { %v1816_v28 = vpop.xlane.xlu2 %1815 }
 0x62a   : > { %v1851_v29 = vsub.f32 %v4490_v2, %v1816_v28  ;;  %v1852_v36 = vsub.f32 %v4492_v38, %v1816_v28 }
 0x62c   : > { %v3297_v39 = vpop.eup %3296  ;;  %v1905_v9 = vmul.f32 1.442695, %v1851_v29  ;;  %v1907_v23 = vmul.f32 1.442695, %v1852_v36 }
 0x62d   : > { %v3299_v48 = vpop.eup %3298 }
 0x62e   : > { %3300 = vpow2.f32 %v1905_v9  ;;  %v1955_v26 = vadd.f32 %v3299_v48, %v3297_v39 }
 0x62f   : > { %3302 = vpow2.f32 %v1907_v23 }
 0x630   : > { %1956 = vadd.xlane.f32.xlu2 %v1955_v26 }
 0x631   : > { %v1819_v56 = vpop.xlane.xlu0 %1818 }
 0x632   : > { %v1853_v1 = vsub.f32 %v4496_v3, %v1819_v56  ;;  %v1854_v31 = vsub.f32 %v4498_v11, %v1819_v56 }
 0x634   : > { %v3301_v32 = vpop.eup %3300  ;;  %v1909_v2 = vmul.f32 1.442695, %v1853_v1  ;;  %v1911_v24 = vmul.f32 1.442695, %v1854_v31 }
 0x635   : > { %v3303_v38 = vpop.eup %3302  ;;  %v1983_v27 = vpack.c.bf16 %v3301_v32, %v3297_v39 }
 0x636   : > { %3304 = vpow2.f32 %v1909_v2  ;;  %v1984_v34 = vpack.c.bf16 %v3303_v38, %v3299_v48  ;;  %v1958_v40 = vadd.f32 %v3303_v38, %v3301_v32 }
 0x637   : > { %3306 = vpow2.f32 %v1911_v24  ;;  %2150 = vmatmul.bf16.gmra.mxu3 %v1983_v27 }
 0x638   : > { %2199 = vmatmul.bf16.vlgmr.msrb.gmra.mxu1 %v1984_v34  ;;  %1959 = vadd.xlane.f32.xlu0 %v1958_v40 }
 0x639   : > { %v1822_v58 = vpop.xlane.xlu1 %1821 }
 0x63a   : > { %v1855_v35 = vsub.f32 %v4502_v54, %v1822_v58  ;;  %v1856_v3 = vsub.f32 %v4504_v60, %v1822_v58 }
 0x63c   : > { %v3305_v41 = vpop.eup %3304  ;;  %v1913_v11 = vmul.f32 1.442695, %v1855_v35  ;;  %v1915_v33 = vmul.f32 1.442695, %v1856_v3 }
 0x63d   : > { %v3307_v52 = vpop.eup %3306 }
 0x63e   : > { %3308 = vpow2.f32 %v1913_v11  ;;  %v1961_v47 = vadd.f32 %v3307_v52, %v3305_v41 }
 0x63f   : > { %3310 = vpow2.f32 %v1915_v33 }
 0x640   : > { %1962 = vadd.xlane.f32.xlu1 %v1961_v47 }
 0x641   : > { %v1825_v62 = vpop.xlane.xlu2 %1824 }
 0x642   : > { %v1857_v53 = vsub.f32 %v4508_v17, %v1825_v62  ;;  %v1858_v55 = vsub.f32 %v4510_v4, %v1825_v62 }
 0x644   : > { %v3309_v7 = vpop.eup %3308  ;;  %v1917_v57 = vmul.f32 1.442695, %v1857_v53  ;;  %v1919_v54 = vmul.f32 1.442695, %v1858_v55 }
 0x645   : > { %v3311_v30 = vpop.eup %3310  ;;  %v1985_v60 = vpack.c.bf16 %v3309_v7, %v3305_v41 }
 0x646   : > { %3312 = vpow2.f32 %v1917_v57  ;;  %v1986_v43 = vpack.c.bf16 %v3311_v30, %v3307_v52  ;;  %v1964_v59 = vadd.f32 %v3311_v30, %v3309_v7 }
 0x647   : > { %3314 = vpow2.f32 %v1919_v54  ;;  %2155 = vmatmul.bf16.gmra.mxu3 %v1985_v60 }
 0x648   : > { %2204 = vmatmul.bf16.gmra.mxu1 %v1986_v43  ;;  %1965 = vadd.xlane.f32.xlu2 %v1964_v59 }
 0x649   : > { %v1828_v63 = vpop.xlane.xlu0 %1827 }
 0x64a   : > { %v1859_v6 = vsub.f32 %v4516_v42, %v1828_v63  ;;  %v1860_v17 = vsub.f32 %v4518_v44, %v1828_v63 }
 0x64c   : > { %v3313_v4 = vpop.eup %3312  ;;  %v1921_v8 = vmul.f32 1.442695, %v1859_v6  ;;  %v1923_v45 = vmul.f32 1.442695, %v1860_v17 }
 0x64d   : > { %v3315_v49 = vpop.eup %3314 }
 0x64e   : > { %3316 = vpow2.f32 %v1921_v8  ;;  %v1967_v37 = vadd.f32 %v3315_v49, %v3313_v4 }
 0x64f   : > { %3318 = vpow2.f32 %v1923_v45 }
 0x650   : > { %1968 = vadd.xlane.f32.xlu0 %v1967_v37 }
 0x653   : > { %v1927_v44 = vpop.xlane.xlu1 %1926 }
 0x654   : > { %v3317_v13 = vpop.eup %3316  ;;  %3320 = vrcp.f32 %v1927_v44 }
 0x655   : > { %v3319_v16 = vpop.eup %3318  ;;  %v1987_v19 = vpack.c.bf16 %v3317_v13, %v3313_v4 }
 0x656   : > { %v1988_v46 = vpack.c.bf16 %v3319_v16, %v3315_v49  ;;  %v1970_v22 = vadd.f32 %v3319_v16, %v3317_v13 }
 0x657   : > { %2160 = vmatmul.bf16.gmra.mxu3 %v1987_v19 }
 0x658   : > { %2209 = vmatmul.bf16.gmra.mxu1 %v1988_v46  ;;  %1971 = vadd.xlane.f32.xlu1 %v1970_v22 }
 0x65a   : > { %v3321_v0 = vpop.eup %3320 }
 0x65b   : > { %v1930_v5 = vpop.xlane.xlu2 %1929 }
 0x65c   : > { %3322 = vrcp.f32 %v1930_v5 }
 0x662   : > { %v3323_v50 = vpop.eup %3322 }
 0x663   : > { %v1933_v39 = vpop.xlane.xlu0 %1932 }
 0x664   : > { %3324 = vrcp.f32 %v1933_v39 }
 0x665   : > { %v2175_v42 = vpop.f32.mrf.mxu0 }
 0x66a   : > { %v2126_v20 = vpop.f32.mrf.mxu2  ;;  %v3325_v56 = vpop.eup %3324 }
 0x66b   : > { %v2176_v51 = vadd.f32 %v2175_v42, %v2126_v20  ;;  %v1936_v23 = vpop.xlane.xlu1 %1935 }
 0x66c   : > { %3326 = vrcp.f32 %v1936_v23 }
 0x66d   : > { %v2177_v25 = vpop.f32.mrf.mxu0  ;;  %v2231_v61 = vmul.f32 %v3321_v0, %v2176_v51 }
 0x672   : > { %v2128_v12 = vpop.f32.mrf.mxu2  ;;  %v3327_v31 = vpop.eup %3326 }
 0x673   : > { %v2178_v21 = vadd.f32 %v2177_v25, %v2128_v12  ;;  %v1939_v27 = vpop.xlane.xlu2 %1938 }
 0x674   : > { %3328 = vrcp.f32 %v1939_v27 }
 0x675   : > { %v2232_v28 = vmul.f32 %v3323_v50, %v2178_v21  ;;  %v2180_v29 = vpop.f32.mrf.mxu0 }
 0x677   : > { %v2247_v36 = vpack.c.bf16 %v2232_v28, %v2231_v61 }
 0x679   : > { %2331 = vmatmul.bf16.vlgmr.msrb.gmra.mxu3 %v2247_v36 }
 0x67a   : > { %v2131_v9 = vpop.f32.mrf.mxu2  ;;  %v3329_v41 = vpop.eup %3328 }
 0x67b   : > { %v2181_v26 = vadd.f32 %v2180_v29, %v2131_v9  ;;  %v1942_v40 = vpop.xlane.xlu0 %1941 }
 0x67c   : > { %3330 = vrcp.f32 %v1942_v40 }
 0x67d   : > { %v2182_v48 = vpop.f32.mrf.mxu0  ;;  %v2233_v32 = vmul.f32 %v3325_v56, %v2181_v26 }
 0x682   : > { %v2133_v18 = vpop.f32.mrf.mxu2  ;;  %v3331_v33 = vpop.eup %3330 }
 0x683   : > { %v2183_v1 = vadd.f32 %v2182_v48, %v2133_v18  ;;  %v1945_v53 = vpop.xlane.xlu1 %1944 }
 0x684   : > { %3332 = vrcp.f32 %v1945_v53  ;;  %v4555_v53 = vld [vmem:[%s4718_s15] ss:$0 sm:$0xff]  ;;  %s3502_s15 = sshra.s32 %s2422_s14, 4  ;;  %s3503_s15 = int_to_ptr.hbm [resolvable:$true] %s3502_s15 }
 0x685   : > { %v2234_v2 = vmul.f32 %v3327_v31, %v2183_v1  ;;  %v2185_v24 = vpop.f32.mrf.mxu0  ;;  %s3504_s6 = scalar_lea.hbm %s3503_s15, 128  ;;  %p3509_p2 = scmp.lt.s32.totalorder %s3503_s15, %s4720_s1 }
 0x686   : > { %p3505_p1 = scmp.ne.s32.totalorder %s3503_s15, %s3504_s6  ;;  %p3510_p4 = scmp.lt.s32.totalorder %s3508_s9, %s3504_s6 }
 0x687   : > { %v2248_v38 = vpack.c.bf16 %v2234_v2, %v2233_v32 }
 0x688   : > { %p3506_p11 = pnand %p3505_p1, %p3770_p7  ;;  %p3511_p5 = por %p3510_p4, %p3509_p2 }
 0x689   : > { %2336 = vmatmul.bf16.gmra.mxu3 %v2248_v38 }
 0x68a   : > { %v2136_v34 = vpop.f32.mrf.mxu2  ;;  %v3333_v60 = vpop.eup %3332  ;;  %p3507_p0 = pneg %p3506_p11 }
 0x68b   : > { %v2186_v35 = vadd.f32 %v2185_v24, %v2136_v34  ;;  %v1948_v7 = vpop.xlane.xlu2 %1947 }
 0x68c   : > { %3334 = vrcp.f32 %v1948_v7  ;;  %p3512_p6 = pnand %p3511_p5, %p3507_p0 }
 0x68d   : > { %v2187_v58 = vpop.f32.mrf.mxu0  ;;  %v2235_v15 = vmul.f32 %v3329_v41, %v2186_v35 }
 0x692   : > { %v2138_v3 = vpop.f32.mrf.mxu2  ;;  %v3335_v43 = vpop.eup %3334 }
 0x693   : > { %v2188_v11 = vadd.f32 %v2187_v58, %v2138_v3  ;;  %v1951_v4 = vpop.xlane.xlu0 %1950 }
 0x694   : > { %3336 = vrcp.f32 %v1951_v4 }
 0x695   : > { %v2236_v52 = vmul.f32 %v3331_v33, %v2188_v11  ;;  %v2190_v47 = vpop.f32.mrf.mxu0 }
 0x697   : > { %v2249_v62 = vpack.c.bf16 %v2236_v52, %v2235_v15 }
 0x699   : > { %2341 = vmatmul.bf16.gmra.mxu3 %v2249_v62 }
 0x69a   : > { %v2141_v55 = vpop.f32.mrf.mxu3  ;;  %v3337_v13 = vpop.eup %3336 }
 0x69b   : > { %v2191_v54 = vadd.f32 %v2190_v47, %v2141_v55  ;;  %v1954_v45 = vpop.xlane.xlu1 %1953 }
 0x69c   : > { %3338 = vrcp.f32 %v1954_v45  ;;  %v3355_v45 = vld [vmem:[%s4340_s12 + $0x18] sm:$0xff] }
 0x69d   : > { %v2192_v57 = vpop.f32.mrf.mxu0  ;;  %v2237_v59 = vmul.f32 %v3333_v60, %v2191_v54 }
 0x6a2   : > { %v2143_v30 = vpop.f32.mrf.mxu3  ;;  %v3339_v19 = vpop.eup %3338 }
 0x6a3   : > { %v2193_v14 = vadd.f32 %v2192_v57, %v2143_v30  ;;  %v1957_v20 = vpop.xlane.xlu2 %1956  ;;  %v3352_v57 = vld [vmem:[%s4340_s12] sm:$0xff] }
 0x6a4   : > { %3340 = vrcp.f32 %v1957_v20 }
 0x6a5   : > { %v2238_v63 = vmul.f32 %v3335_v43, %v2193_v14  ;;  %v2195_v17 = vpop.f32.mrf.mxu0  ;;  %v3353_v14 = vld [vmem:[%s4340_s12 + $0x8] sm:$0xff] }
 0x6a7   : > { %v2250_v6 = vpack.c.bf16 %v2238_v63, %v2237_v59 }
 0x6a9   : > { %2346 = vmatmul.bf16.gmra.mxu3 %v2250_v6  ;;  %v3354_v6 = vld [vmem:[%s4340_s12 + $0x10] sm:$0xff] }
 0x6aa   : > { %v2146_v8 = vpop.f32.mrf.mxu3  ;;  %v3341_v21 = vpop.eup %3340 }
 0x6ab   : > { %v2196_v49 = vadd.f32 %v2195_v17, %v2146_v8  ;;  %v1960_v25 = vpop.xlane.xlu0 %1959 }
 0x6ac   : > { %3342 = vrcp.f32 %v1960_v25 }
 0x6ad   : > { %v2197_v10 = vpop.f32.mrf.mxu0  ;;  %v2239_v46 = vmul.f32 %v3337_v13, %v2196_v49  ;;  %v3356_v13 = vld [vmem:[%s4340_s12 + $0x20] sm:$0xff] }
 0x6b2   : > { %v2148_v37 = vpop.f32.mrf.mxu3  ;;  %v3343_v61 = vpop.eup %3342 }
 0x6b3   : > { %v2198_v16 = vadd.f32 %v2197_v10, %v2148_v37  ;;  %v1963_v9 = vpop.xlane.xlu1 %1962 }
 0x6b4   : > { %3344 = vrcp.f32 %v1963_v9  ;;  %v3361_v9 = vld [vmem:[%s4340_s12 + $0x48] sm:$0xff] }
 0x6b5   : > { %v2240_v22 = vmul.f32 %v3339_v19, %v2198_v16  ;;  %v2200_v42 = vpop.f32.mrf.mxu1 }
 0x6b7   : > { %v2251_v44 = vpack.c.bf16 %v2240_v22, %v2239_v46  ;;  %v3357_v22 = vld [vmem:[%s4340_s12 + $0x28] sm:$0xff] }
 0x6b9   : > { %2351 = vmatmul.bf16.gmra.mxu3 %v2251_v44 }
 0x6ba   : > { %v2151_v5 = vpop.f32.mrf.mxu3  ;;  %v3345_v1 = vpop.eup %3344 }
 0x6bb   : > { %v2201_v12 = vadd.f32 %v2200_v42, %v2151_v5  ;;  %v1966_v48 = vpop.xlane.xlu2 %1965  ;;  %v3358_v5 = vld [vmem:[%s4340_s12 + $0x30] sm:$0xff] }
 0x6bc   : > { %3346 = vrcp.f32 %v1966_v48 }
 0x6bd   : > { %v2202_v51 = vpop.f32.mrf.mxu1  ;;  %v2241_v28 = vmul.f32 %v3341_v21, %v2201_v12 }
 0x6c2   : > { %v2153_v0 = vpop.f32.mrf.mxu3  ;;  %v3347_v32 = vpop.eup %3346 }
 0x6c3   : > { %v2203_v50 = vadd.f32 %v2202_v51, %v2153_v0  ;;  %v1969_v34 = vpop.xlane.xlu0 %1968  ;;  %v3359_v0 = vld [vmem:[%s4340_s12 + $0x38] sm:$0xff] }
 0x6c4   : > { %3348 = vrcp.f32 %v1969_v34 }
 0x6c5   : > { %v2242_v29 = vmul.f32 %v3343_v61, %v2203_v50  ;;  %v2205_v36 = vpop.f32.mrf.mxu1 }
 0x6c7   : > { %v2252_v39 = vpack.c.bf16 %v2242_v29, %v2241_v28  ;;  %v3360_v28 = vld [vmem:[%s4340_s12 + $0x40] sm:$0xff] }
 0x6c9   : > { %2356 = vmatmul.bf16.gmra.mxu3 %v2252_v39 }
 0x6ca   : > { %v2156_v23 = vpop.f32.mrf.mxu3  ;;  %v3349_v11 = vpop.eup %3348 }
 0x6cb   : > { %v2206_v18 = vadd.f32 %v2205_v36, %v2156_v23  ;;  %v1972_v58 = vpop.xlane.xlu1 %1971 }
 0x6cc   : > { %3350 = vrcp.f32 %v1972_v58 }
 0x6cd   : > { %v2207_v26 = vpop.f32.mrf.mxu1  ;;  %v2243_v2 = vmul.f32 %v3345_v1, %v2206_v18  ;;  %v3362_v18 = vld [vmem:[%s4340_s12 + $0x50] sm:$0xff] }
 0x6d2   : > { %v2158_v56 = vpop.f32.mrf.mxu3  ;;  %v3351_v15 = vpop.eup %3350 }
 0x6d3   : > { %v2208_v31 = vadd.f32 %v2207_v26, %v2158_v56 }
 0x6d5   : > { %v2244_v24 = vmul.f32 %v3347_v32, %v2208_v31  ;;  %v2210_v27 = vpop.f32.mrf.mxu1  ;;  %v3363_v32 = vld [vmem:[%s4340_s12 + $0x58] sm:$0xff] }
 0x6d7   : > { %v2253_v38 = vpack.c.bf16 %v2244_v24, %v2243_v2 }
 0x6d9   : > { %2361 = vmatmul.bf16.gmra.mxu3 %v2253_v38 }
 0x6da   : > { %v2161_v40 = vpop.f32.mrf.mxu3 }
 0x6db   : > { %v2211_v35 = vadd.f32 %v2210_v27, %v2161_v40  ;;  %v3364_v27 = vld [vmem:[%s4340_s12 + $0x60] sm:$0xff] }
 0x6dd   : > { %v2212_v3 = vpop.f32.mrf.mxu1  ;;  %v2245_v52 = vmul.f32 %v3349_v11, %v2211_v35  ;;  %v3365_v35 = vld [vmem:[%s4340_s12 + $0x68] sm:$0xff] }
 0x6e2   : > { %v2163_v41 = vpop.f32.mrf.mxu3 }
 0x6e3   : > { %v2213_v33 = vadd.f32 %v2212_v3, %v2163_v41 }
 0x6e5   : > { %v2246_v47 = vmul.f32 %v3351_v15, %v2213_v33  ;;  %v3366_v33 = vld [vmem:[%s4340_s12 + $0x70] sm:$0xff] }
 0x6e7   : > { %v2254_v62 = vpack.c.bf16 %v2246_v47, %v2245_v52 }
 0x6e9   : > { %2366 = vmatmul.bf16.gmra.mxu3 %v2254_v62  ;;  %v3367_v62 = vld [vmem:[%s4340_s12 + $0x78] sm:$0xff] }
 0x6fc   : > { %v2332_v55 = vpop.f32.mrf.mxu3 }
 0x6fd   : > { %v2333_v7 = vadd.f32 %v4555_v53, %v2332_v55 }
 0x6ff   : > { %v2372_v54 = vadd.f32 %v3352_v57, %v2333_v7 }
 0x701   : > { %2388 = vst [vmem:[%s3864_s10] sm:$0xff] %v2372_v54 }
 0x704   : > { %v2334_v30 = vpop.f32.mrf.mxu3 }
 0x705   : > { %v2335_v60 = vadd.f32 %v4555_v53, %v2334_v30 }
 0x707   : > { %v2373_v43 = vadd.f32 %v3353_v14, %v2335_v60 }
 0x709   : > { %2389 = vst [vmem:[%s3864_s10 + $0x8] sm:$0xff] %v2373_v43 }
 0x70c   : > { %v2337_v59 = vpop.f32.mrf.mxu3 }
 0x70d   : > { %v2338_v63 = vadd.f32 %v4555_v53, %v2337_v59 }
 0x70f   : > { %v2374_v17 = vadd.f32 %v3354_v6, %v2338_v63 }
 0x711   : > { %2390 = vst [vmem:[%s3864_s10 + $0x10] sm:$0xff] %v2374_v17 }
 0x714   : > { %v2339_v4 = vpop.f32.mrf.mxu3 }
 0x715   : > { %v2340_v8 = vadd.f32 %v4555_v53, %v2339_v4 }
 0x717   : > { %v2375_v49 = vadd.f32 %v3355_v45, %v2340_v8 }
 0x719   : > { %2391 = vst [vmem:[%s3864_s10 + $0x18] sm:$0xff] %v2375_v49 }
 0x71c   : > { %v2342_v10 = vpop.f32.mrf.mxu3 }
 0x71d   : > { %v2343_v37 = vadd.f32 %v4555_v53, %v2342_v10 }
 0x71f   : > { %v2376_v16 = vadd.f32 %v3356_v13, %v2343_v37 }
 0x721   : > { %2392 = vst [vmem:[%s3864_s10 + $0x20] sm:$0xff] %v2376_v16 }
 0x724   : > { %v2344_v19 = vpop.f32.mrf.mxu3 }
 0x725   : > { %v2345_v46 = vadd.f32 %v4555_v53, %v2344_v19 }
 0x727   : > { %v2377_v42 = vadd.f32 %v3357_v22, %v2345_v46 }
 0x729   : > { %2393 = vst [vmem:[%s3864_s10 + $0x28] sm:$0xff] %v2377_v42 }
 0x72c   : > { %v2347_v44 = vpop.f32.mrf.mxu3 }
 0x72d   : > { %v2348_v20 = vadd.f32 %v4555_v53, %v2347_v44 }
 0x72f   : > { %v2378_v25 = vadd.f32 %v3358_v5, %v2348_v20 }
 0x731   : > { %2394 = vst [vmem:[%s3864_s10 + $0x30] sm:$0xff] %v2378_v25 }
 0x734   : > { %v2349_v51 = vpop.f32.mrf.mxu3 }
 0x735   : > { %v2350_v12 = vadd.f32 %v4555_v53, %v2349_v51 }
 0x737   : > { %v2379_v21 = vadd.f32 %v3359_v0, %v2350_v12 }
 0x739   : > { %2395 = vst [vmem:[%s3864_s10 + $0x38] sm:$0xff] %v2379_v21 }
 0x73c   : > { %v2352_v50 = vpop.f32.mrf.mxu3 }
 0x73d   : > { %v2353_v61 = vadd.f32 %v4555_v53, %v2352_v50 }
 0x73f   : > { %v2380_v29 = vadd.f32 %v3360_v28, %v2353_v61 }
 0x741   : > { %2396 = vst [vmem:[%s3864_s10 + $0x40] sm:$0xff] %v2380_v29 }
 0x744   : > { %v2354_v36 = vpop.f32.mrf.mxu3 }
 0x745   : > { %v2355_v39 = vadd.f32 %v4555_v53, %v2354_v36 }
 0x747   : > { %v2381_v23 = vadd.f32 %v3361_v9, %v2355_v39 }
 0x749   : > { %2397 = vst [vmem:[%s3864_s10 + $0x48] sm:$0xff] %v2381_v23 }
 0x74c   : > { %v2357_v48 = vpop.f32.mrf.mxu3 }
 0x74d   : > { %v2358_v26 = vadd.f32 %v4555_v53, %v2357_v48 }
 0x74f   : > { %v2382_v56 = vadd.f32 %v3362_v18, %v2358_v26 }
 0x751   : > { %2398 = vst [vmem:[%s3864_s10 + $0x50] sm:$0xff] %v2382_v56 }
 0x754   : > { %v2359_v1 = vpop.f32.mrf.mxu3 }
 0x755   : > { %v2360_v31 = vadd.f32 %v4555_v53, %v2359_v1 }
 0x757   : > { %v2383_v2 = vadd.f32 %v3363_v32, %v2360_v31 }
 0x759   : > { %2399 = vst [vmem:[%s3864_s10 + $0x58] sm:$0xff] %v2383_v2 }
 0x75c   : > { %v2362_v24 = vpop.f32.mrf.mxu3 }
 0x75d   : > { %v2363_v38 = vadd.f32 %v4555_v53, %v2362_v24 }
 0x75f   : > { %v2384_v34 = vadd.f32 %v3364_v27, %v2363_v38 }
 0x761   : > { %2400 = vst [vmem:[%s3864_s10 + $0x60] sm:$0xff] %v2384_v34 }
 0x764   : > { %v2364_v40 = vpop.f32.mrf.mxu3 }
 0x765   : > { %v2365_v58 = vadd.f32 %v4555_v53, %v2364_v40 }
 0x767   : > { %v2385_v3 = vadd.f32 %v3365_v35, %v2365_v58 }
 0x769   : > { %2401 = vst [vmem:[%s3864_s10 + $0x68] sm:$0xff] %v2385_v3 }
 0x76c   : > { %v2367_v41 = vpop.f32.mrf.mxu3 }
 0x76d   : > { %v2368_v11 = vadd.f32 %v4555_v53, %v2367_v41 }
 0x76f   : > { %v2386_v15 = vadd.f32 %v3366_v33, %v2368_v11 }
 0x771   : > { %2402 = vst [vmem:[%s3864_s10 + $0x70] sm:$0xff] %v2386_v15 }
 0x774   : > { %v2369_v52 = vpop.f32.mrf.mxu3 }
 0x775   : > { %v2370_v47 = vadd.f32 %v4555_v53, %v2369_v52 }
 0x777   : > { %v2387_v55 = vadd.f32 %v3367_v62, %v2370_v47 }
 0x779   : > { %2403 = vst [vmem:[%s3864_s10 + $0x78] sm:$0xff] %v2387_v55 }
 0x77a   : > { %3515 = shalt.err (!%p3512_p6)
}
 0x77b   : > { %s3627_s2 = smov 128   ;;  %s3628_s10 = smov 8  }
 0x77c   : > { %3123 = dma.vmem_to_hbm [thread:$0]  (%p3770_p7), %s2420_s11, 2048, %s2422_s14, %s2405_s8, %s3627_s2, %s3627_s2, %s3628_s10  }
 0x77d PF: > { %s4722_s12 = sld [smem:[#allocation19_spill]]  ;;  %p3150_p8 = scmp.ge.s32.totalorder %s3618_s18, 2 }
 0x77f   : > { %p3140_p10 = pnand %p3150_p8, %p3775_p9 }
 0x781   : > { %p3141_p12 = pneg %p3140_p10 }
 0x783   : > { %s2436_s28 = sand.u32 1, %s4722_s12  }
 0x784   : > { %s2437_s16 = scalar_lea.sflag [#allocation8], %s2436_s28 }
 0x785   : > { %3573 = dma.done.wait (%p3141_p12), %s2437_s16, 2048  }
 0x786   : > { %3575 = vsyncadd (%p3141_p12), %s2437_s16, 4294965248  ;;  %s31_s18 = sadd.s32 1, %s3618_s18   ;;  %s4724_s14 = sld [smem:[#allocation21_spill]] }
 0x787   : > { %p28_p13 = scmp.ge.s32.totalorder %s31_s18, 6   ;;  %s4725_s16 = sld [smem:[#allocation24_spill]] }
 0x788   : > { %s4726_s25 = smov %s3582_s26  ;;  %s4727_s26 = smov %s3586_s27 }
 0x789   : > { %s4728_s27 = smov %s3835_s22  ;;  %s4729_s28 = smov %s3594_s29 }
 0x78a   : > { %s4730_s29 = smov %s3598_s30  ;;  %s4731_s30 = smov %s3830_s24 }
 0x78b   : > { %s4732_s15 = smov %s3614_s17  ;;  %s4733_s17 = smov %s4739_s20 }
 0x78c   :  { %30 = sbr.rel (!%p28_p13) target bundleno = 23 (0x17), region = 134 }
 0x791   :  { %2443 = vsyncpa [#allocation7], 1 }
 0x792   :  { %2445 = vsyncpa [#allocation7 + $0x1], 1 }
 0x793   :  { %2446 = vsyncpa [#allocation10], 1 }
 0x794   :  { %2447 = vsyncpa [#allocation13], 1 }
 0x795   :  { %2448 = vsyncpa [#allocation8], 1 }
 0x796   :  { %2450 = vsyncpa [#allocation8 + $0x1], 1 }

</bundles_post_ra>
